<compile_context>
chip_gen: v6e
topology: v6e:2x2x1
jax: 0.10.0
libtpu: 0.0.40
codegen_flags: <defaults>
</compile_context>

<pallas_src>
import functools

import jax
import jax.numpy as jnp
from jax.experimental import pallas as pl
from jax.experimental.pallas import tpu as pltpu

_EPS = 1e-5   # nn.BatchNorm1d default eps
_K1 = 8       # conv1 tap dim padded 3 -> 8 (lane-friendlier x DMA / dot K)


def _round_up(n, m):
    return ((n + m - 1) // m) * m


def _pick_tb(batch):
    """Batch tile: multiple of 16 (bf16 sublane packing), <= 128; when the
    batch allows it, pick a tile that yields >= 2 grid steps (v7x: 2 TCs)."""
    b16 = _round_up(batch, 16)
    if b16 <= 16:
        return 16
    if b16 <= 256:
        return min(128, _round_up((b16 + 1) // 2, 16))
    return 128


# -----------------------------------------------------------------------------
# In-kernel helpers (traced inside the Pallas kernel)
# -----------------------------------------------------------------------------
def _shift_up(a, tb):
    """result[l*tb + b] = a[(l-1)*tb + b]; zeros for l == 0 (conv zero pad)."""
    z = jnp.zeros((tb,) + a.shape[1:], a.dtype)
    return jnp.concatenate([z, a[: a.shape[0] - tb]], axis=0)


def _shift_down(a, tb):
    """result[l*tb + b] = a[(l+1)*tb + b]; zeros for l == Lp-1 (conv zero pad)."""
    z = jnp.zeros((tb,) + a.shape[1:], a.dtype)
    return jnp.concatenate([a[tb:], z], axis=0)


def _pool2_and_mask(y, lp, lv_new, tb):
    """MaxPool1d(2) along the length axis of an (lp*tb, C) f32 slab
    (rows = l*tb+b), then zero rows with l >= lv_new so the next conv sees
    PyTorch's zero padding at the true (floored) sequence boundary."""
    c = y.shape[1]
    y4 = y.reshape(lp // 2, 2 * tb, c)                      # 2*tb tile aligned
    p = jnp.maximum(y4[:, :tb, :], y4[:, tb:, :])           # pairwise max (VPU)
    p = p.reshape((lp // 2) * tb, c)
    if lv_new < lp // 2:                                    # static: only when padded
        row = jax.lax.broadcasted_iota(jnp.int32, (p.shape[0], 1), 0)
        p = jnp.where(row < lv_new * tb, p, 0.0)
    return p


def _conv_bn_relu_pool(a, w_flat, shift, lp, lv_new, tb):
    """a: (lp*tb, Cin) f32 (rows = l*tb+b, padded rows already zero)
    w_flat: (3*Cin, Cout) bf16 with BN scale folded, taps ordered [l-1, l, l+1]
    shift: (1, Cout) f32 (conv bias + BN shift folded)
    Returns (lp//2*tb, Cout) f32 after Conv+BN+ReLU+MaxPool(2)."""
    ab = a.astype(jnp.bfloat16)                              # single cast / block
    taps = jnp.concatenate(
        [_shift_up(ab, tb), ab, _shift_down(ab, tb)], axis=1)  # (lp*tb, 3*Cin)
    y = jnp.dot(taps, w_flat, preferred_element_type=jnp.float32)
    y = jnp.maximum(y + shift, 0.0)                          # elementwise in f32
    return _pool2_and_mask(y, lp, lv_new, tb)


# -----------------------------------------------------------------------------
# Fused kernel
# -----------------------------------------------------------------------------
def _cnn1d_kernel(xt_ref, w1_ref, s1_ref, w2_ref, s2_ref, w3_ref, s3_ref,
                  wfc_ref, bfc_ref, wout_ref, bout_ref, o_ref,
                  *, tb, lp0, lp1, lp2, lp3, l1, l2, l3):
    # ---- block 1: Conv1d(1->32)+BN+ReLU+Pool.  Taps were im2col'ed in the
    # wrapper, so this is a single (lp0*tb, 8) x (8, 32) dot (kept f32: K is
    # tiny and it preserves raw-input precision).
    xt = xt_ref[...].reshape(lp0 * tb, _K1)                  # rows = l*tb+b (free)
    y = jnp.dot(xt, w1_ref[...], preferred_element_type=jnp.float32)
    y = jnp.maximum(y + s1_ref[...], 0.0)
    a1 = _pool2_and_mask(y, lp0, l1, tb)                     # (lp1*tb, 32)
    # (Dropout(0.2) after block 1 is eval-mode identity.)

    # ---- blocks 2 / 3: im2col 3-tap fusion -> one bf16 MXU dot each ---------
    a2 = _conv_bn_relu_pool(a1, w2_ref[...], s2_ref[...], lp1, l2, tb)  # (.,64)
    a3 = _conv_bn_relu_pool(a2, w3_ref[...], s3_ref[...], lp2, l3, tb)  # (.,128)

    # ---- head: lane-concat the lp3 (tb,128) tiles (== torch .view on NCL,
    # matched by the wrapper's wfc layout) -> ONE large-K matmul, then the
    # output projection (lane-padded to a multiple of 128 for a dense store).
    a3b = a3.astype(jnp.bfloat16)
    flat = jnp.concatenate(
        [a3b[l * tb:(l + 1) * tb, :] for l in range(lp3)], axis=1)  # (tb, lp3*128)
    h = jnp.dot(flat, wfc_ref[...], preferred_element_type=jnp.float32)
    h = jnp.maximum(h + bfc_ref[...], 0.0)
    out = jnp.dot(h.astype(jnp.bfloat16), wout_ref[...],
                  preferred_element_type=jnp.float32) + bout_ref[...]
    o_ref[...] = out


# -----------------------------------------------------------------------------
# Wrapper: layout prep, BN folding, pallas_call
# -----------------------------------------------------------------------------
def cnn1d_forward(x_ncl, params, *, tb=None):
    """x_ncl: (B, 1, L) float32 -- same layout as the PyTorch module input."""
    b, cin, l0 = x_ncl.shape
    assert cin == 1 and l0 >= 8
    if tb is None:
        tb = _pick_tb(b)
    assert tb % 16 == 0
    lp0 = _round_up(l0, 8)                          # padded length, multiple of 8
    l1, l2, l3 = l0 // 2, l0 // 4, l0 // 8          # true (floored) pooled lengths
    lp1, lp2, lp3 = lp0 // 2, lp0 // 4, lp0 // 8
    b_pad = _round_up(b, tb)

    # --- conv1 im2col in the wrapper: taps [x[l-1], x[l], x[l+1], 0...] -------
    xl = jnp.pad(x_ncl[:, 0, :].astype(jnp.float32),
                 ((0, b_pad - b), (0, lp0 - l0)))            # (B_pad, Lp0)
    up = jnp.pad(xl[:, :-1], ((0, 0), (1, 0)))               # x[l-1]
    dn = jnp.pad(xl[:, 1:], ((0, 0), (0, 1)))                # x[l+1]
    xt = jnp.stack([up, xl, dn], axis=-1)                    # (B_pad, Lp0, 3)
    xt = jnp.pad(xt, ((0, 0), (0, 0), (0, _K1 - 3)))         # pad taps 3 -> 8
    xt = jnp.transpose(xt, (1, 0, 2))                        # (Lp0, B_pad, 8)

    # --- fold BatchNorm (eval) + conv bias into conv weights / shift ----------
    def fold(p, wdtype):
        scale = p["gamma"] * jax.lax.rsqrt(p["var"] + _EPS)
        w = jnp.transpose(p["w"], (2, 1, 0)) * scale[None, None, :]   # (3,Cin,Cout)
        shift = p["beta"] + (p["b"] - p["mean"]) * scale
        return w.astype(wdtype), shift.reshape(1, -1).astype(jnp.float32)

    w1, s1 = fold(params["conv1"], jnp.float32)              # conv1 stays f32
    w1 = jnp.pad(w1.reshape(3, 32), ((0, _K1 - 3), (0, 0)))  # (8, 32)
    w2, s2 = fold(params["conv2"], jnp.bfloat16)
    w2 = w2.reshape(3 * 32, 64)                              # (96, 64)   im2col K
    w3, s3 = fold(params["conv3"], jnp.bfloat16)
    w3 = w3.reshape(3 * 64, 128)                             # (192, 128) im2col K

    # --- FC weight: torch flattens NCL as c*L3+l; kernel lane-concats length
    # tiles so K index is l*128 + c.  Padded-l rows are zero.
    wfc = params["fc"]["w"].reshape(-1, 128, l3)             # (64, 128, L3)
    wfc = jnp.transpose(wfc, (2, 1, 0))                      # (L3, 128, 64)
    wfc = jnp.pad(wfc, ((0, lp3 - l3), (0, 0), (0, 0)))
    wfc = wfc.reshape(lp3 * 128, 64).astype(jnp.bfloat16)
    bfc = params["fc"]["b"].reshape(1, -1).astype(jnp.float32)

    n_cls = params["out"]["w"].shape[0]
    n_out = _round_up(max(n_cls, 128), 128)                  # lane-dense store
    wout = jnp.transpose(params["out"]["w"]).astype(jnp.bfloat16)    # (64, n_cls)
    wout = jnp.pad(wout, ((0, 0), (0, n_out - n_cls)))
    bout = jnp.pad(params["out"]["b"].reshape(1, -1).astype(jnp.float32),
                   ((0, 0), (0, n_out - n_cls)))

    kernel = functools.partial(
        _cnn1d_kernel, tb=tb, lp0=lp0, lp1=lp1, lp2=lp2, lp3=lp3,
        l1=l1, l2=l2, l3=l3)

    out = pl.pallas_call(
        kernel,
        out_shape=jax.ShapeDtypeStruct((b_pad, n_out), jnp.float32),
        grid=(b_pad // tb,),
        in_specs=[
            pl.BlockSpec((lp0, tb, _K1), lambda i: (0, i, 0)),   # x batch tile
            pl.BlockSpec(w1.shape, lambda i: (0, 0)),
            pl.BlockSpec(s1.shape, lambda i: (0, 0)),
            pl.BlockSpec(w2.shape, lambda i: (0, 0)),
            pl.BlockSpec(s2.shape, lambda i: (0, 0)),
            pl.BlockSpec(w3.shape, lambda i: (0, 0)),
            pl.BlockSpec(s3.shape, lambda i: (0, 0)),
            pl.BlockSpec(wfc.shape, lambda i: (0, 0)),
            pl.BlockSpec(bfc.shape, lambda i: (0, 0)),
            pl.BlockSpec(wout.shape, lambda i: (0, 0)),
            pl.BlockSpec(bout.shape, lambda i: (0, 0)),
        ],
        out_specs=pl.BlockSpec((tb, n_out), lambda i: (i, 0)),
        compiler_params=pltpu.CompilerParams(
            dimension_semantics=("parallel",)),
    )(xt, w1, s1, w2, s2, w3, s3, wfc, bfc, wout, bout)
    return out[:b, :n_cls]


# -----------------------------------------------------------------------------
# Pure-JAX float32 reference (PyTorch eval-mode semantics) for the self-check
# -----------------------------------------------------------------------------
def cnn1d_reference(x_ncl, params):
    b = x_ncl.shape[0]
    x = jnp.transpose(x_ncl, (0, 2, 1)).astype(jnp.float32)   # (B, L, 1)
    for name in ("conv1", "conv2", "conv3"):
        p = params[name]
        bsz, l, _ = x.shape
        xpad = jnp.pad(x, ((0, 0), (1, 1), (0, 0)))
        y = jnp.zeros((bsz, l, p["w"].shape[0]), jnp.float32)
        for k in range(3):
            y = y + jnp.einsum("blc,oc->blo", xpad[:, k:k + l, :], p["w"][:, :, k])
        scale = p["gamma"] / jnp.sqrt(p["var"] + _EPS)
        shift = p["beta"] + (p["b"] - p["mean"]) * scale
        y = jnp.maximum(y * scale + shift, 0.0)
        lout = l // 2                                          # MaxPool1d(2) floors
        x = jnp.max(y[:, :2 * lout, :].reshape(bsz, lout, 2, -1), axis=2)
    flat = jnp.transpose(x, (0, 2, 1)).reshape(b, -1)          # torch .view on NCL
    h = jnp.maximum(flat @ params["fc"]["w"].T + params["fc"]["b"], 0.0)
    return h @ params["out"]["w"].T + params["out"]["b"]


# -----------------------------------------------------------------------------
# Deterministic parameter init (PyTorch tensor layouts) + driver
# -----------------------------------------------------------------------------
def init_params(key, input_size, num_classes):
    def conv_params(k, cin, cout):
        ks = jax.random.split(k, 6)
        return {
            "w": 0.1 * jax.random.normal(ks[0], (cout, cin, 3), jnp.float32),
            "b": 0.1 * jax.random.normal(ks[1], (cout,), jnp.float32),
            "gamma": 1.0 + 0.1 * jax.random.normal(ks[2], (cout,), jnp.float32),
            "beta": 0.1 * jax.random.normal(ks[3], (cout,), jnp.float32),
            "mean": 0.1 * jax.random.normal(ks[4], (cout,), jnp.float32),
            "var": 0.5 + jax.random.uniform(ks[5], (cout,), jnp.float32),
        }

    k1, k2, k3, k4, k5, k6, k7 = jax.random.split(key, 7)
    flat = 128 * (input_size // 8)                 # == module's flat_features
    return {
        "conv1": conv_params(k1, 1, 32),
        "conv2": conv_params(k2, 32, 64),
        "conv3": conv_params(k3, 64, 128),
        "fc": {"w": 0.05 * jax.random.normal(k4, (64, flat), jnp.float32),
               "b": 0.05 * jax.random.normal(k5, (64,), jnp.float32)},
        "out": {"w": 0.05 * jax.random.normal(k6, (num_classes, 64), jnp.float32),
                "b": 0.05 * jax.random.normal(k7, (num_classes,), jnp.float32)},
    }


if __name__ == "__main__":
    NUM_CLASSES = 2
    # (batch, input_size):
    #  - (2, 22): odd / floored pooled lengths + length padding (22->11->5->2)
    #  - (9, 16): no length padding, single grid step
    #  - (33, 178): module default length, multi-step batch grid (tb=32, 2 steps)
    configs = [(2, 22), (9, 16), (33, 178)]

    fwd = jax.jit(cnn1d_forward)
    key = jax.random.PRNGKey(0)
    for i, (batch, input_size) in enumerate(configs):
        kx, kp = jax.random.split(jax.random.fold_in(key, i))
        x = jax.random.normal(kx, (batch, 1, input_size), jnp.float32)  # NCL input
        params = init_params(kp, input_size, NUM_CLASSES)

        out = jax.block_until_ready(fwd(x, params))
        ref = jax.block_until_ready(cnn1d_reference(x, params))

        assert out.shape == (batch, NUM_CLASSES)
        # bf16 matmul operands (f32 accumulation) vs. pure-f32 reference.
        assert jnp.allclose(out, ref, atol=3e-2, rtol=3e-2), (out, ref)

    print("KERNEL_OK")
</pallas_src>

<mosaic_0001>
module attributes {stable_mosaic.version = 11 : i64} {
  func.func @_cnn1d_kernel(%arg0: i32, %arg1: memref<24x16x8xf32, #tpu.memory_space<vmem>>, %arg2: memref<8x32xf32, #tpu.memory_space<vmem>>, %arg3: memref<1x32xf32, #tpu.memory_space<vmem>>, %arg4: memref<96x64xbf16, #tpu.memory_space<vmem>>, %arg5: memref<1x64xf32, #tpu.memory_space<vmem>>, %arg6: memref<192x128xbf16, #tpu.memory_space<vmem>>, %arg7: memref<1x128xf32, #tpu.memory_space<vmem>>, %arg8: memref<384x64xbf16, #tpu.memory_space<vmem>>, %arg9: memref<1x64xf32, #tpu.memory_space<vmem>>, %arg10: memref<64x128xbf16, #tpu.memory_space<vmem>>, %arg11: memref<1x128xf32, #tpu.memory_space<vmem>>, %arg12: memref<16x128xf32, #tpu.memory_space<vmem>>) attributes {dimension_semantics = [#tpu.dimension_semantics<parallel>], iteration_bounds = array<i64: 1>, scalar_prefetch = 0 : i64, scratch_operands = 0 : i64, tpu.core_type = #tpu.core_type<tc>, window_params = [{transform_indices = @transform_0, window_bounds = array<i64: 24, 16, 8>}, {pipeline_mode = #tpu.pipeline_mode<synchronous>, transform_indices = @transform_1, window_bounds = array<i64: 8, 32>}, {pipeline_mode = #tpu.pipeline_mode<synchronous>, transform_indices = @transform_2, window_bounds = array<i64: 1, 32>}, {pipeline_mode = #tpu.pipeline_mode<synchronous>, transform_indices = @transform_3, window_bounds = array<i64: 96, 64>}, {pipeline_mode = #tpu.pipeline_mode<synchronous>, transform_indices = @transform_4, window_bounds = array<i64: 1, 64>}, {pipeline_mode = #tpu.pipeline_mode<synchronous>, transform_indices = @transform_5, window_bounds = array<i64: 192, 128>}, {pipeline_mode = #tpu.pipeline_mode<synchronous>, transform_indices = @transform_6, window_bounds = array<i64: 1, 128>}, {pipeline_mode = #tpu.pipeline_mode<synchronous>, transform_indices = @transform_7, window_bounds = array<i64: 384, 64>}, {pipeline_mode = #tpu.pipeline_mode<synchronous>, transform_indices = @transform_8, window_bounds = array<i64: 1, 64>}, {pipeline_mode = #tpu.pipeline_mode<synchronous>, transform_indices = @transform_9, window_bounds = array<i64: 64, 128>}, {pipeline_mode = #tpu.pipeline_mode<synchronous>, transform_indices = @transform_10, window_bounds = array<i64: 1, 128>}, {transform_indices = @transform_11, window_bounds = array<i64: 16, 128>}]} {
    %c0 = arith.constant 0 : index
    %c0_0 = arith.constant 0 : index
    %c0_1 = arith.constant 0 : index
    %0 = vector.load %arg1[%c0, %c0_0, %c0_1] : memref<24x16x8xf32, #tpu.memory_space<vmem>>, vector<24x16x8xf32>
    %1 = vector.shape_cast %0 : vector<24x16x8xf32> to vector<384x8xf32>
    %c0_2 = arith.constant 0 : index
    %c0_3 = arith.constant 0 : index
    %2 = vector.load %arg2[%c0_2, %c0_3] : memref<8x32xf32, #tpu.memory_space<vmem>>, vector<8x32xf32>
    %cst = arith.constant dense<0.000000e+00> : vector<384x32xf32>
    %3 = tpu.matmul %1, %2, %cst {dimension_numbers = #tpu.dot_dimension_numbers<[1], [0], [0], [1], [0, 0, 1, 1], [], []>} : vector<384x8xf32>, vector<8x32xf32>, vector<384x32xf32> -> vector<384x32xf32>
    %c0_4 = arith.constant 0 : index
    %c0_5 = arith.constant 0 : index
    %4 = vector.load %arg3[%c0_4, %c0_5] : memref<1x32xf32, #tpu.memory_space<vmem>>, vector<1x32xf32>
    %5 = vector.broadcast %4 : vector<1x32xf32> to vector<384x32xf32>
    %6 = arith.addf %3, %5 : vector<384x32xf32>
    %cst_6 = arith.constant 0.000000e+00 : f32
    %7 = vector.broadcast %cst_6 : f32 to vector<384x32xf32>
    %8 = arith.maximumf %6, %7 : vector<384x32xf32>
    %9 = vector.shape_cast %8 : vector<384x32xf32> to vector<12x32x32xf32>
    %10 = vector.extract_strided_slice %9 {offsets = [0, 0, 0], sizes = [12, 16, 32], strides = [1, 1, 1]} : vector<12x32x32xf32> to vector<12x16x32xf32>
    %11 = vector.extract_strided_slice %9 {offsets = [0, 16, 0], sizes = [12, 16, 32], strides = [1, 1, 1]} : vector<12x32x32xf32> to vector<12x16x32xf32>
    %12 = arith.maximumf %10, %11 : vector<12x16x32xf32>
    %13 = vector.shape_cast %12 : vector<12x16x32xf32> to vector<192x32xf32>
    %14 = tpu.iota {dimensions = array<i32: 0>} : vector<192x1xi32>
    %c176_i32 = arith.constant 176 : i32
    %15 = vector.broadcast %c176_i32 : i32 to vector<192x1xi32>
    %16 = arith.cmpi slt, %14, %15 : vector<192x1xi32>
    %cst_7 = arith.constant 0.000000e+00 : f32
    %17 = vector.shape_cast %16 : vector<192x1xi1> to vector<192x1xi1>
    %18 = vector.broadcast %17 : vector<192x1xi1> to vector<192x32xi1>
    %19 = vector.broadcast %cst_7 : f32 to vector<192x32xf32>
    %20 = arith.select %18, %13, %19 : vector<192x32xi1>, vector<192x32xf32>
    %c0_8 = arith.constant 0 : index
    %c0_9 = arith.constant 0 : index
    %21 = vector.load %arg4[%c0_8, %c0_9] : memref<96x64xbf16, #tpu.memory_space<vmem>>, vector<96x64xbf16>
    %c0_10 = arith.constant 0 : index
    %c0_11 = arith.constant 0 : index
    %22 = vector.load %arg5[%c0_10, %c0_11] : memref<1x64xf32, #tpu.memory_space<vmem>>, vector<1x64xf32>
    %23 = arith.truncf %20 : vector<192x32xf32> to vector<192x32xbf16>
    %cst_12 = arith.constant 0.000000e+00 : bf16
    %24 = vector.broadcast %cst_12 : bf16 to vector<16x32xbf16>
    %25 = vector.extract_strided_slice %23 {offsets = [0, 0], sizes = [176, 32], strides = [1, 1]} : vector<192x32xbf16> to vector<176x32xbf16>
    %26 = tpu.concatenate %24, %25 in 0 : vector<16x32xbf16>, vector<176x32xbf16> -> vector<192x32xbf16>
    %cst_13 = arith.constant 0.000000e+00 : bf16
    %27 = vector.broadcast %cst_13 : bf16 to vector<16x32xbf16>
    %28 = vector.extract_strided_slice %23 {offsets = [16, 0], sizes = [176, 32], strides = [1, 1]} : vector<192x32xbf16> to vector<176x32xbf16>
    %29 = tpu.concatenate %28, %27 in 0 : vector<176x32xbf16>, vector<16x32xbf16> -> vector<192x32xbf16>
    %30 = tpu.concatenate %26, %23, %29 in 1 : vector<192x32xbf16>, vector<192x32xbf16>, vector<192x32xbf16> -> vector<192x96xbf16>
    %cst_14 = arith.constant dense<0.000000e+00> : vector<192x64xf32>
    %31 = tpu.matmul %30, %21, %cst_14 {dimension_numbers = #tpu.dot_dimension_numbers<[1], [0], [0], [1], [0, 0, 1, 1], [], []>} : vector<192x96xbf16>, vector<96x64xbf16>, vector<192x64xf32> -> vector<192x64xf32>
    %32 = vector.broadcast %22 : vector<1x64xf32> to vector<192x64xf32>
    %33 = arith.addf %31, %32 : vector<192x64xf32>
    %cst_15 = arith.constant 0.000000e+00 : f32
    %34 = vector.broadcast %cst_15 : f32 to vector<192x64xf32>
    %35 = arith.maximumf %33, %34 : vector<192x64xf32>
    %36 = vector.shape_cast %35 : vector<192x64xf32> to vector<6x32x64xf32>
    %37 = vector.extract_strided_slice %36 {offsets = [0, 0, 0], sizes = [6, 16, 64], strides = [1, 1, 1]} : vector<6x32x64xf32> to vector<6x16x64xf32>
    %38 = vector.extract_strided_slice %36 {offsets = [0, 16, 0], sizes = [6, 16, 64], strides = [1, 1, 1]} : vector<6x32x64xf32> to vector<6x16x64xf32>
    %39 = arith.maximumf %37, %38 : vector<6x16x64xf32>
    %40 = vector.shape_cast %39 : vector<6x16x64xf32> to vector<96x64xf32>
    %41 = tpu.iota {dimensions = array<i32: 0>} : vector<96x1xi32>
    %c80_i32 = arith.constant 80 : i32
    %42 = vector.broadcast %c80_i32 : i32 to vector<96x1xi32>
    %43 = arith.cmpi slt, %41, %42 : vector<96x1xi32>
    %cst_16 = arith.constant 0.000000e+00 : f32
    %44 = vector.shape_cast %43 : vector<96x1xi1> to vector<96x1xi1>
    %45 = vector.broadcast %44 : vector<96x1xi1> to vector<96x64xi1>
    %46 = vector.broadcast %cst_16 : f32 to vector<96x64xf32>
    %47 = arith.select %45, %40, %46 : vector<96x64xi1>, vector<96x64xf32>
    %c0_17 = arith.constant 0 : index
    %c0_18 = arith.constant 0 : index
    %48 = vector.load %arg6[%c0_17, %c0_18] : memref<192x128xbf16, #tpu.memory_space<vmem>>, vector<192x128xbf16>
    %c0_19 = arith.constant 0 : index
    %c0_20 = arith.constant 0 : index
    %49 = vector.load %arg7[%c0_19, %c0_20] : memref<1x128xf32, #tpu.memory_space<vmem>>, vector<1x128xf32>
    %50 = arith.truncf %47 : vector<96x64xf32> to vector<96x64xbf16>
    %cst_21 = arith.constant 0.000000e+00 : bf16
    %51 = vector.broadcast %cst_21 : bf16 to vector<16x64xbf16>
    %52 = vector.extract_strided_slice %50 {offsets = [0, 0], sizes = [80, 64], strides = [1, 1]} : vector<96x64xbf16> to vector<80x64xbf16>
    %53 = tpu.concatenate %51, %52 in 0 : vector<16x64xbf16>, vector<80x64xbf16> -> vector<96x64xbf16>
    %cst_22 = arith.constant 0.000000e+00 : bf16
    %54 = vector.broadcast %cst_22 : bf16 to vector<16x64xbf16>
    %55 = vector.extract_strided_slice %50 {offsets = [16, 0], sizes = [80, 64], strides = [1, 1]} : vector<96x64xbf16> to vector<80x64xbf16>
    %56 = tpu.concatenate %55, %54 in 0 : vector<80x64xbf16>, vector<16x64xbf16> -> vector<96x64xbf16>
    %57 = tpu.concatenate %53, %50, %56 in 1 : vector<96x64xbf16>, vector<96x64xbf16>, vector<96x64xbf16> -> vector<96x192xbf16>
    %cst_23 = arith.constant dense<0.000000e+00> : vector<96x128xf32>
    %58 = tpu.matmul %57, %48, %cst_23 {dimension_numbers = #tpu.dot_dimension_numbers<[1], [0], [0], [1], [0, 0, 1, 1], [], []>} : vector<96x192xbf16>, vector<192x128xbf16>, vector<96x128xf32> -> vector<96x128xf32>
    %59 = vector.broadcast %49 : vector<1x128xf32> to vector<96x128xf32>
    %60 = arith.addf %58, %59 : vector<96x128xf32>
    %cst_24 = arith.constant 0.000000e+00 : f32
    %61 = vector.broadcast %cst_24 : f32 to vector<96x128xf32>
    %62 = arith.maximumf %60, %61 : vector<96x128xf32>
    %63 = vector.shape_cast %62 : vector<96x128xf32> to vector<3x32x128xf32>
    %64 = vector.extract_strided_slice %63 {offsets = [0, 0, 0], sizes = [3, 16, 128], strides = [1, 1, 1]} : vector<3x32x128xf32> to vector<3x16x128xf32>
    %65 = vector.extract_strided_slice %63 {offsets = [0, 16, 0], sizes = [3, 16, 128], strides = [1, 1, 1]} : vector<3x32x128xf32> to vector<3x16x128xf32>
    %66 = arith.maximumf %64, %65 : vector<3x16x128xf32>
    %67 = vector.shape_cast %66 : vector<3x16x128xf32> to vector<48x128xf32>
    %68 = tpu.iota {dimensions = array<i32: 0>} : vector<48x1xi32>
    %c32_i32 = arith.constant 32 : i32
    %69 = vector.broadcast %c32_i32 : i32 to vector<48x1xi32>
    %70 = arith.cmpi slt, %68, %69 : vector<48x1xi32>
    %cst_25 = arith.constant 0.000000e+00 : f32
    %71 = vector.shape_cast %70 : vector<48x1xi1> to vector<48x1xi1>
    %72 = vector.broadcast %71 : vector<48x1xi1> to vector<48x128xi1>
    %73 = vector.broadcast %cst_25 : f32 to vector<48x128xf32>
    %74 = arith.select %72, %67, %73 : vector<48x128xi1>, vector<48x128xf32>
    %75 = arith.truncf %74 : vector<48x128xf32> to vector<48x128xbf16>
    %76 = vector.extract_strided_slice %75 {offsets = [0, 0], sizes = [16, 128], strides = [1, 1]} : vector<48x128xbf16> to vector<16x128xbf16>
    %77 = vector.extract_strided_slice %75 {offsets = [16, 0], sizes = [16, 128], strides = [1, 1]} : vector<48x128xbf16> to vector<16x128xbf16>
    %78 = vector.extract_strided_slice %75 {offsets = [32, 0], sizes = [16, 128], strides = [1, 1]} : vector<48x128xbf16> to vector<16x128xbf16>
    %79 = tpu.concatenate %76, %77, %78 in 1 : vector<16x128xbf16>, vector<16x128xbf16>, vector<16x128xbf16> -> vector<16x384xbf16>
    %c0_26 = arith.constant 0 : index
    %c0_27 = arith.constant 0 : index
    %80 = vector.load %arg8[%c0_26, %c0_27] : memref<384x64xbf16, #tpu.memory_space<vmem>>, vector<384x64xbf16>
    %cst_28 = arith.constant dense<0.000000e+00> : vector<16x64xf32>
    %81 = tpu.matmul %79, %80, %cst_28 {dimension_numbers = #tpu.dot_dimension_numbers<[1], [0], [0], [1], [0, 0, 1, 1], [], []>} : vector<16x384xbf16>, vector<384x64xbf16>, vector<16x64xf32> -> vector<16x64xf32>
    %c0_29 = arith.constant 0 : index
    %c0_30 = arith.constant 0 : index
    %82 = vector.load %arg9[%c0_29, %c0_30] : memref<1x64xf32, #tpu.memory_space<vmem>>, vector<1x64xf32>
    %83 = vector.broadcast %82 : vector<1x64xf32> to vector<16x64xf32>
    %84 = arith.addf %81, %83 : vector<16x64xf32>
    %cst_31 = arith.constant 0.000000e+00 : f32
    %85 = vector.broadcast %cst_31 : f32 to vector<16x64xf32>
    %86 = arith.maximumf %84, %85 : vector<16x64xf32>
    %87 = arith.truncf %86 : vector<16x64xf32> to vector<16x64xbf16>
    %c0_32 = arith.constant 0 : index
    %c0_33 = arith.constant 0 : index
    %88 = vector.load %arg10[%c0_32, %c0_33] : memref<64x128xbf16, #tpu.memory_space<vmem>>, vector<64x128xbf16>
    %cst_34 = arith.constant dense<0.000000e+00> : vector<16x128xf32>
    %89 = tpu.matmul %87, %88, %cst_34 {dimension_numbers = #tpu.dot_dimension_numbers<[1], [0], [0], [1], [0, 0, 1, 1], [], []>} : vector<16x64xbf16>, vector<64x128xbf16>, vector<16x128xf32> -> vector<16x128xf32>
    %c0_35 = arith.constant 0 : index
    %c0_36 = arith.constant 0 : index
    %90 = vector.load %arg11[%c0_35, %c0_36] : memref<1x128xf32, #tpu.memory_space<vmem>>, vector<1x128xf32>
    %91 = vector.broadcast %90 : vector<1x128xf32> to vector<16x128xf32>
    %92 = arith.addf %89, %91 : vector<16x128xf32>
    %c0_37 = arith.constant 0 : index
    %c0_38 = arith.constant 0 : index
    %93 = vector.load %arg12[%c0_37, %c0_38] : memref<16x128xf32, #tpu.memory_space<vmem>>, vector<16x128xf32>
    tpu.vector_store %arg12[%c0_37, %c0_38], %92 {strides = array<i32>} : memref<16x128xf32, #tpu.memory_space<vmem>>, vector<16x128xf32>,
    return
  }
  func.func @transform_0(%arg0: i32) -> (i32, i32, i32) {
    %c0_i32 = arith.constant 0 : i32
    %c0_i32_0 = arith.constant 0 : i32
    %c0_i32_1 = arith.constant 0 : i32
    return %c0_i32, %arg0, %c0_i32_0 : i32, i32, i32
  }
  func.func @transform_1(%arg0: i32) -> (i32, i32) {
    %c0_i32 = arith.constant 0 : i32
    %c0_i32_0 = arith.constant 0 : i32
    %c0_i32_1 = arith.constant 0 : i32
    return %c0_i32, %c0_i32_0 : i32, i32
  }
  func.func @transform_2(%arg0: i32) -> (i32, i32) {
    %c0_i32 = arith.constant 0 : i32
    %c0_i32_0 = arith.constant 0 : i32
    %c0_i32_1 = arith.constant 0 : i32
    return %c0_i32, %c0_i32_0 : i32, i32
  }
  func.func @transform_3(%arg0: i32) -> (i32, i32) {
    %c0_i32 = arith.constant 0 : i32
    %c0_i32_0 = arith.constant 0 : i32
    %c0_i32_1 = arith.constant 0 : i32
    return %c0_i32, %c0_i32_0 : i32, i32
  }
  func.func @transform_4(%arg0: i32) -> (i32, i32) {
    %c0_i32 = arith.constant 0 : i32
    %c0_i32_0 = arith.constant 0 : i32
    %c0_i32_1 = arith.constant 0 : i32
    return %c0_i32, %c0_i32_0 : i32, i32
  }
  func.func @transform_5(%arg0: i32) -> (i32, i32) {
    %c0_i32 = arith.constant 0 : i32
    %c0_i32_0 = arith.constant 0 : i32
    %c0_i32_1 = arith.constant 0 : i32
    return %c0_i32, %c0_i32_0 : i32, i32
  }
  func.func @transform_6(%arg0: i32) -> (i32, i32) {
    %c0_i32 = arith.constant 0 : i32
    %c0_i32_0 = arith.constant 0 : i32
    %c0_i32_1 = arith.constant 0 : i32
    return %c0_i32, %c0_i32_0 : i32, i32
  }
  func.func @transform_7(%arg0: i32) -> (i32, i32) {
    %c0_i32 = arith.constant 0 : i32
    %c0_i32_0 = arith.constant 0 : i32
    %c0_i32_1 = arith.constant 0 : i32
    return %c0_i32, %c0_i32_0 : i32, i32
  }
  func.func @transform_8(%arg0: i32) -> (i32, i32) {
    %c0_i32 = arith.constant 0 : i32
    %c0_i32_0 = arith.constant 0 : i32
    %c0_i32_1 = arith.constant 0 : i32
    return %c0_i32, %c0_i32_0 : i32, i32
  }
  func.func @transform_9(%arg0: i32) -> (i32, i32) {
    %c0_i32 = arith.constant 0 : i32
    %c0_i32_0 = arith.constant 0 : i32
    %c0_i32_1 = arith.constant 0 : i32
    return %c0_i32, %c0_i32_0 : i32, i32
  }
  func.func @transform_10(%arg0: i32) -> (i32, i32) {
    %c0_i32 = arith.constant 0 : i32
    %c0_i32_0 = arith.constant 0 : i32
    %c0_i32_1 = arith.constant 0 : i32
    return %c0_i32, %c0_i32_0 : i32, i32
  }
  func.func @transform_11(%arg0: i32) -> (i32, i32) {
    %c0_i32 = arith.constant 0 : i32
    %c0_i32_0 = arith.constant 0 : i32
    return %arg0, %c0_i32 : i32, i32
  }
}

</mosaic_0001>

<bundles_post_ra>
// kernel: cnn1d_forward.1
= control target key start
LH: loop header
LB: loop body
LE: loop exit
PB: predicated region body
PF: predicated region fallthrough
CT: control target
= control target key end

     0   :  { %vm95_vm0 = vcmask 64512   ;;  %s2243_s20 = smov 32   ;;  %vm824_vm1 = vcmask 261120   ;;  %vm861_vm2 = vcmask 523264   ;;  %vm928_vm3 = vcmask 785408   ;;  %s2911_s1 = inlined_call_operand.vmem [shape: f32[8,32], index: 1, kind: input, shape index: {}]   ;;  %s2912_s0 = inlined_call_operand.vmem [shape: f32[24,16,8], index: 0, kind: input, shape index: {}]   ;;  %s2913_s3 = inlined_call_operand.vmem [shape: bf16[96,64], index: 3, kind: input, shape index: {}]   ;;  %s2914_s2 = inlined_call_operand.vmem [shape: f32[1,32], index: 2, kind: input, shape index: {}]   ;;  %s2915_s5 = inlined_call_operand.vmem [shape: bf16[192,128], index: 5, kind: input, shape index: {}]   ;;  %s2916_s4 = inlined_call_operand.vmem [shape: f32[1,64], index: 4, kind: input, shape index: {}]   ;;  %s2917_s7 = inlined_call_operand.vmem [shape: bf16[384,64], index: 7, kind: input, shape index: {}]   ;;  %s2918_s6 = inlined_call_operand.vmem [shape: f32[1,128], index: 6, kind: input, shape index: {}]   ;;  %s2919_s9 = inlined_call_operand.vmem [shape: bf16[64,128], index: 9, kind: input, shape index: {}]   ;;  %s2920_s8 = inlined_call_operand.vmem [shape: f32[1,64], index: 8, kind: input, shape index: {}]   ;;  %s2921_s10 = inlined_call_operand.vmem [shape: f32[1,128], index: 10, kind: input, shape index: {}]   ;;  %s2922_s11 = inlined_call_operand.vmem [shape: f32[16,128], index: 11, kind: output, shape index: {}]  }
   0x1   :  { %v87_v0 = vld [vmem:[%s2911_s1] sm:$0xff]  ;;  %v40_v2 = vld [vmem:[%s2912_s0 + $0x8] sm:$0xff]  ;;  %v41_v3 = vld [vmem:[%s2912_s0 + $0x10] sm:$0xff]  ;;  %vm2248_vm5 = vmmov 0  }
   0x2   :  { %v39_v1 = vld [vmem:[%s2912_s0] sm:$0xff]  ;;  %2049 = vmatprep.subr.mxu0 %v87_v0  ;;  %v42_v4 = vld [vmem:[%s2912_s0 + $0x18] sm:$0xff]  ;;  %v44_v6 = vld [vmem:[%s2912_s0 + $0x28] sm:$0xff] }
   0x3   :  { %2051 = vmatprep.mubr.msk.f32.mxu0 %vm95_vm0, %v39_v1  ;;  %2050 = vmatpush3.msra.mxu0 %v87_v0  ;;  %v43_v5 = vld [vmem:[%s2912_s0 + $0x20] sm:$0xff]  ;;  %v45_v7 = vld [vmem:[%s2912_s0 + $0x30] sm:$0xff]  ;;  %v46_v8 = vld [vmem:[%s2912_s0 + $0x38] sm:$0xff] }
   0x4   :  { %2052 = vmatmul.mubr.msk.f32.vlgmr.msra.gmra.mxu0 %vm95_vm0, %v40_v2  ;;  %v47_v9 = vld [vmem:[%s2912_s0 + $0x40] sm:$0xff]  ;;  %v48_v10 = vld [vmem:[%s2912_s0 + $0x48] sm:$0xff]  ;;  %v49_v11 = vld [vmem:[%s2912_s0 + $0x50] sm:$0xff] }
   0x5   :  { %2054 = vmatprep.mubr.msk.f32.mxu0 %vm95_vm0, %v41_v3  ;;  %v50_v12 = vld [vmem:[%s2912_s0 + $0x58] sm:$0xff]  ;;  %v51_v13 = vld [vmem:[%s2912_s0 + $0x60] sm:$0xff]  ;;  %v52_v14 = vld [vmem:[%s2912_s0 + $0x68] sm:$0xff] }
   0x6   :  { %v53_v15 = vld [vmem:[%s2912_s0 + $0x70] sm:$0xff]  ;;  %v54_v16 = vld [vmem:[%s2912_s0 + $0x78] sm:$0xff]  ;;  %v55_v17 = vld [vmem:[%s2912_s0 + $0x80] sm:$0xff] }
   0x7   :  { %v56_v18 = vld [vmem:[%s2912_s0 + $0x88] sm:$0xff]  ;;  %v57_v19 = vld [vmem:[%s2912_s0 + $0x90] sm:$0xff]  ;;  %v58_v20 = vld [vmem:[%s2912_s0 + $0x98] sm:$0xff] }
   0x8   :  { %2055 = vmatmul.mubr.msk.f32.gmra.mxu0 %vm95_vm0, %v42_v4  ;;  %v59_v21 = vld [vmem:[%s2912_s0 + $0xa0] sm:$0xff]  ;;  %v60_v22 = vld [vmem:[%s2912_s0 + $0xa8] sm:$0xff]  ;;  %v61_v23 = vld [vmem:[%s2912_s0 + $0xb0] sm:$0xff] }
   0x9   :  { %2057 = vmatprep.mubr.msk.f32.mxu0 %vm95_vm0, %v43_v5  ;;  %v62_v24 = vld [vmem:[%s2912_s0 + $0xb8] sm:$0xff]  ;;  %v63_v25 = vld [vmem:[%s2912_s0 + $0xc0] sm:$0xff]  ;;  %v64_v26 = vld [vmem:[%s2912_s0 + $0xc8] sm:$0xff] }
   0xa   :  { %v65_v27 = vld [vmem:[%s2912_s0 + $0xd0] sm:$0xff]  ;;  %v66_v28 = vld [vmem:[%s2912_s0 + $0xd8] sm:$0xff]  ;;  %v67_v29 = vld [vmem:[%s2912_s0 + $0xe0] sm:$0xff] }
   0xb   :  { %v68_v30 = vld [vmem:[%s2912_s0 + $0xe8] sm:$0xff]  ;;  %v69_v31 = vld [vmem:[%s2912_s0 + $0xf0] sm:$0xff]  ;;  %v70_v32 = vld [vmem:[%s2912_s0 + $0xf8] sm:$0xff] }
   0xc   :  { %2058 = vmatmul.mubr.msk.f32.gmra.mxu0 %vm95_vm0, %v44_v6  ;;  %v71_v33 = vld [vmem:[%s2912_s0 + $0x100] sm:$0xff]  ;;  %v72_v34 = vld [vmem:[%s2912_s0 + $0x108] sm:$0xff]  ;;  %v73_v35 = vld [vmem:[%s2912_s0 + $0x110] sm:$0xff] }
   0xd   :  { %2060 = vmatprep.mubr.msk.f32.mxu0 %vm95_vm0, %v45_v7  ;;  %v74_v36 = vld [vmem:[%s2912_s0 + $0x118] sm:$0xff]  ;;  %v75_v37 = vld [vmem:[%s2912_s0 + $0x120] sm:$0xff]  ;;  %v76_v38 = vld [vmem:[%s2912_s0 + $0x128] sm:$0xff] }
   0xe   :  { %v77_v39 = vld [vmem:[%s2912_s0 + $0x130] sm:$0xff]  ;;  %v78_v40 = vld [vmem:[%s2912_s0 + $0x138] sm:$0xff]  ;;  %v79_v41 = vld [vmem:[%s2912_s0 + $0x140] sm:$0xff] }
   0xf   :  { %v80_v42 = vld [vmem:[%s2912_s0 + $0x148] sm:$0xff]  ;;  %v81_v43 = vld [vmem:[%s2912_s0 + $0x150] sm:$0xff]  ;;  %v82_v44 = vld [vmem:[%s2912_s0 + $0x158] sm:$0xff] }
  0x10   :  { %2061 = vmatmul.mubr.msk.f32.gmra.mxu0 %vm95_vm0, %v46_v8  ;;  %v2197_v45 = vld [vmem:[%s2913_s3 + $0x28] sm:$0xff]   ;;  %v2198_v46 = vld [vmem:[%s2913_s3 + $0x20] sm:$0xff]   ;;  %v2199_v48 = vld [vmem:[%s2913_s3 + $0x18] sm:$0xff]  }
  0x11   :  { %2063 = vmatprep.mubr.msk.f32.mxu0 %vm95_vm0, %v47_v9  ;;  %2123 = vmatprep.subr.bf16.mxu1 %v2197_v45  ;;  %v2500_v49 = vld [vmem:[%s2914_s2] ss:$0 sm:$0xff]  ;;  %v2200_v51 = vld [vmem:[%s2913_s3 + $0x10] sm:$0xff]   ;;  %v2201_v63 = vld [vmem:[%s2913_s3 + $0x8] sm:$0xff]  }
  0x12   :  { %2124 = vmatpush3.bf16.msra.mxu1 %v2197_v45  ;;  %v2202_v3 = vld [vmem:[%s2913_s3] sm:$0xff]   ;;  %s2245_s3 = smov 64   ;;  %vm1910_vm4 = vmneg %vm861_vm2 }
  0x13   :  { %2125 = vmatprep.subr.bf16.mxu1 %v2198_v46 }
  0x14   :  { %2064 = vmatmul.mubr.msk.f32.gmra.mxu0 %vm95_vm0, %v48_v10 }
  0x15   :  { %2066 = vmatprep.mubr.msk.f32.mxu0 %vm95_vm0, %v49_v11 }
  0x16   :  { %2126 = vmatpush3.bf16.msra.mxu1 %v2198_v46 }
  0x17   :  { %2127 = vmatprep.subr.bf16.mxu1 %v2199_v48 }
  0x18   :  { %2067 = vmatmul.mubr.msk.f32.gmra.mxu0 %vm95_vm0, %v50_v12 }
  0x19   :  { %2069 = vmatprep.mubr.msk.f32.mxu0 %vm95_vm0, %v51_v13 }
  0x1a   :  { %2128 = vmatpush3.bf16.msra.mxu1 %v2199_v48 }
  0x1b   :  { %2129 = vmatprep.subr.bf16.mxu1 %v2200_v51 }
  0x1c   :  { %2070 = vmatmul.mubr.msk.f32.gmra.mxu0 %vm95_vm0, %v52_v14 }
  0x1d   :  { %2072 = vmatprep.mubr.msk.f32.mxu0 %vm95_vm0, %v53_v15 }
  0x1e   :  { %2130 = vmatpush3.bf16.msra.mxu1 %v2200_v51 }
  0x1f   :  { %2131 = vmatprep.subr.bf16.mxu1 %v2201_v63 }
  0x20   :  { %2073 = vmatmul.mubr.msk.f32.gmra.mxu0 %vm95_vm0, %v54_v16  ;;  %v2244_v16 = vmov 0  }
  0x21   :  { %2075 = vmatprep.mubr.msk.f32.mxu0 %vm95_vm0, %v55_v17 }
  0x22   :  { %2132 = vmatpush3.bf16.msra.mxu1 %v2201_v63 }
  0x23   :  { %2133 = vmatprep.subr.bf16.mxu1 %v2202_v3 }
  0x24   :  { %2076 = vmatmul.mubr.msk.f32.gmra.mxu0 %vm95_vm0, %v56_v18 }
  0x25   :  { %2078 = vmatprep.mubr.msk.f32.mxu0 %vm95_vm0, %v57_v19 }
  0x26   :  { %2134 = vmatpush3.bf16.msra.mxu1 %v2202_v3 }
  0x27   :  { %1329 = vmatprep.subr.bf16.mxu1 %v2244_v16 }
  0x28   :  { %2079 = vmatmul.mubr.msk.f32.gmra.mxu0 %vm95_vm0, %v58_v20 }
  0x29   :  { %2081 = vmatprep.mubr.msk.f32.mxu0 %vm95_vm0, %v59_v21 }
  0x2c   :  { %2082 = vmatmul.mubr.msk.f32.gmra.mxu0 %vm95_vm0, %v60_v22 }
  0x2d   :  { %2084 = vmatprep.mubr.msk.f32.mxu0 %vm95_vm0, %v61_v23 }
  0x30   :  { %2085 = vmatmul.mubr.msk.f32.gmra.mxu0 %vm95_vm0, %v62_v24 }
  0x31   :  { %2087 = vmatprep.mubr.msk.f32.mxu0 %vm95_vm0, %v63_v25 }
  0x34   :  { %2088 = vmatmul.mubr.msk.f32.gmra.mxu0 %vm95_vm0, %v64_v26 }
  0x35   :  { %2090 = vmatprep.mubr.msk.f32.mxu0 %vm95_vm0, %v65_v27 }
  0x38   :  { %2091 = vmatmul.mubr.msk.f32.gmra.mxu0 %vm95_vm0, %v66_v28 }
  0x39   :  { %2093 = vmatprep.mubr.msk.f32.mxu0 %vm95_vm0, %v67_v29 }
  0x3c   :  { %2094 = vmatmul.mubr.msk.f32.gmra.mxu0 %vm95_vm0, %v68_v30 }
  0x3d   :  { %2096 = vmatprep.mubr.msk.f32.mxu0 %vm95_vm0, %v69_v31 }
  0x40   :  { %2097 = vmatmul.mubr.msk.f32.gmra.mxu0 %vm95_vm0, %v70_v32 }
  0x41   :  { %2099 = vmatprep.mubr.msk.f32.mxu0 %vm95_vm0, %v71_v33 }
  0x44   :  { %2100 = vmatmul.mubr.msk.f32.gmra.mxu0 %vm95_vm0, %v72_v34 }
  0x45   :  { %2102 = vmatprep.mubr.msk.f32.mxu0 %vm95_vm0, %v73_v35 }
  0x48   :  { %2103 = vmatmul.mubr.msk.f32.gmra.mxu0 %vm95_vm0, %v74_v36 }
  0x49   :  { %2105 = vmatprep.mubr.msk.f32.mxu0 %vm95_vm0, %v75_v37 }
  0x4c   :  { %2106 = vmatmul.mubr.msk.f32.gmra.mxu0 %vm95_vm0, %v76_v38 }
  0x4d   :  { %2108 = vmatprep.mubr.msk.f32.mxu0 %vm95_vm0, %v77_v39 }
  0x50   :  { %2109 = vmatmul.mubr.msk.f32.gmra.mxu0 %vm95_vm0, %v78_v40 }
  0x51   :  { %2111 = vmatprep.mubr.msk.f32.mxu0 %vm95_vm0, %v79_v41 }
  0x54   :  { %2112 = vmatmul.mubr.msk.f32.gmra.mxu0 %vm95_vm0, %v80_v42 }
  0x55   :  { %2114 = vmatprep.mubr.msk.f32.mxu0 %vm95_vm0, %v81_v43 }
  0x58   :  { %2115 = vmatmul.mubr.msk.f32.gmra.mxu0 %vm95_vm0, %v82_v44 }
  0xc4   :  { %v2053_v47 = vpop.f32.mrf.mxu0 }
  0xc5   :  { %v312_v53 = vadd.f32 %v2053_v47, %v2500_v49 }
  0xc6   :  { %v306_v50 = vpop.f32.mrf.mxu0 }
  0xc7   :  { %v307_v54 = vadd.f32 %v2500_v49, %v306_v50  ;;  %v546_v60 = vmax.f32 %v312_v53, 0.0 }
  0xc8   :  { %v2056_v52 = vpop.f32.mrf.mxu0 }
  0xc9   :  { %v322_v55 = vadd.f32 %v2056_v52, %v2500_v49  ;;  %v545_v61 = vmax.f32 %v307_v54, 0.0 }
  0xca   :  { %v316_v56 = vpop.f32.mrf.mxu0 }
  0xcb   :  { %v548_v57 = vmax.f32 %v322_v55, 0.0  ;;  %v317_v58 = vadd.f32 %v2500_v49, %v316_v56 }
  0xcc   :  { %v2059_v59 = vpop.f32.mrf.mxu0 }
  0xcd   :  { %v547_v62 = vmax.f32 %v317_v58, 0.0  ;;  %v594_v1 = vmax.f32 %v546_v60, %v548_v57  ;;  %v332_v5 = vadd.f32 %v2059_v59, %v2500_v49 }
  0xce   :  { %v326_v0 = vpop.f32.mrf.mxu0 }
  0xcf   :  { %v593_v2 = vmax.f32 %v545_v61, %v547_v62  ;;  %v327_v6 = vadd.f32 %v2500_v49, %v326_v0  ;;  %v550_v13 = vmax.f32 %v332_v5, 0.0 }
  0xd0   :  { %v2062_v4 = vpop.f32.mrf.mxu0 }
  0xd1   :  { %v342_v7 = vadd.f32 %v2062_v4, %v2500_v49  ;;  %v2518_v8 = vpack.c.bf16 %v594_v1, %v593_v2  ;;  %v549_v14 = vmax.f32 %v327_v6, 0.0 }
  0xd2   :  { %v336_v9 = vpop.f32.mrf.mxu0 }
  0xd3   :  { %v552_v10 = vmax.f32 %v342_v7, 0.0  ;;  %v337_v11 = vadd.f32 %v2500_v49, %v336_v9  ;;  %775 = vrot.lane.b32.xlu0 %v2518_v8, %s2243_s20 }
  0xd4   :  { %v2065_v12 = vpop.f32.mrf.mxu0 }
  0xd5   :  { %v551_v15 = vmax.f32 %v337_v11, 0.0  ;;  %v596_v18 = vmax.f32 %v550_v13, %v552_v10  ;;  %v352_v21 = vadd.f32 %v2065_v12, %v2500_v49 }
  0xd6   :  { %v346_v17 = vpop.f32.mrf.mxu0 }
  0xd7   :  { %v595_v19 = vmax.f32 %v549_v14, %v551_v15  ;;  %v347_v22 = vadd.f32 %v2500_v49, %v346_v17  ;;  %v554_v29 = vmax.f32 %v352_v21, 0.0 }
  0xd8   :  { %v2068_v20 = vpop.f32.mrf.mxu0 }
  0xd9   :  { %v362_v23 = vadd.f32 %v2068_v20, %v2500_v49  ;;  %v2527_v24 = vpack.c.bf16 %v596_v18, %v595_v19  ;;  %v553_v30 = vmax.f32 %v347_v22, 0.0 }
  0xda   :  { %v356_v25 = vpop.f32.mrf.mxu0 }
  0xdb   :  { %v556_v26 = vmax.f32 %v362_v23, 0.0  ;;  %v357_v27 = vadd.f32 %v2500_v49, %v356_v25  ;;  %800 = vrot.lane.b32.xlu1 %v2527_v24, %s2245_s3  ;;  %777 = vrot.lane.b32.xlu0 %v2527_v24, %s2243_s20 }
  0xdc   :  { %v2071_v28 = vpop.f32.mrf.mxu0 }
  0xdd   :  { %v555_v31 = vmax.f32 %v357_v27, 0.0  ;;  %v598_v33 = vmax.f32 %v554_v29, %v556_v26  ;;  %v372_v36 = vadd.f32 %v2071_v28, %v2500_v49 }
  0xde   :  { %v366_v32 = vpop.f32.mrf.mxu0 }
  0xdf   :  { %v597_v34 = vmax.f32 %v553_v30, %v555_v31  ;;  %v367_v37 = vadd.f32 %v2500_v49, %v366_v32  ;;  %v558_v44 = vmax.f32 %v372_v36, 0.0 }
  0xe0   :  { %v2074_v35 = vpop.f32.mrf.mxu0 }
  0xe1   :  { %v382_v38 = vadd.f32 %v2074_v35, %v2500_v49  ;;  %v2537_v39 = vpack.c.bf16 %v598_v33, %v597_v34  ;;  %v557_v45 = vmax.f32 %v367_v37, 0.0 }
  0xe2   :  { %v376_v40 = vpop.f32.mrf.mxu0 }
  0xe3   :  { %v560_v41 = vmax.f32 %v382_v38, 0.0  ;;  %v377_v42 = vadd.f32 %v2500_v49, %v376_v40  ;;  %802 = vrot.lane.b32.xlu1 %v2537_v39, %s2245_s3  ;;  %779 = vrot.lane.b32.xlu0 %v2537_v39, %s2243_s20 }
  0xe4   :  { %v2077_v43 = vpop.f32.mrf.mxu0 }
  0xe5   :  { %v559_v46 = vmax.f32 %v377_v42, 0.0  ;;  %v600_v48 = vmax.f32 %v558_v44, %v560_v41  ;;  %v392_v52 = vadd.f32 %v2077_v43, %v2500_v49 }
  0xe6   :  { %v386_v47 = vpop.f32.mrf.mxu0 }
  0xe7   :  { %v599_v50 = vmax.f32 %v557_v45, %v559_v46  ;;  %v387_v53 = vadd.f32 %v2500_v49, %v386_v47  ;;  %v562_v60 = vmax.f32 %v392_v52, 0.0 }
  0xe8   :  { %v2080_v51 = vpop.f32.mrf.mxu0 }
  0xe9   :  { %v402_v54 = vadd.f32 %v2080_v51, %v2500_v49  ;;  %v2547_v55 = vpack.c.bf16 %v600_v48, %v599_v50  ;;  %v561_v61 = vmax.f32 %v387_v53, 0.0 }
  0xea   :  { %v396_v56 = vpop.f32.mrf.mxu0 }
  0xeb   :  { %v564_v57 = vmax.f32 %v402_v54, 0.0  ;;  %v397_v58 = vadd.f32 %v2500_v49, %v396_v56  ;;  %781 = vrot.lane.b32.xlu1 %v2547_v55, %s2243_s20  ;;  %804 = vrot.lane.b32.xlu0 %v2547_v55, %s2245_s3 }
  0xec   :  { %v2083_v59 = vpop.f32.mrf.mxu0 }
  0xed   :  { %v563_v62 = vmax.f32 %v397_v58, 0.0  ;;  %v602_v0 = vmax.f32 %v562_v60, %v564_v57  ;;  %v412_v3 = vadd.f32 %v2083_v59, %v2500_v49 }
  0xee   :  { %v406_v63 = vpop.f32.mrf.mxu0 }
  0xef   :  { %v601_v1 = vmax.f32 %v561_v61, %v563_v62  ;;  %v407_v4 = vadd.f32 %v2500_v49, %v406_v63  ;;  %v566_v12 = vmax.f32 %v412_v3, 0.0 }
  0xf0   :  { %v2086_v2 = vpop.f32.mrf.mxu0 }
  0xf1   :  { %v422_v5 = vadd.f32 %v2086_v2, %v2500_v49  ;;  %v2557_v6 = vpack.c.bf16 %v602_v0, %v601_v1  ;;  %v565_v13 = vmax.f32 %v407_v4, 0.0 }
  0xf2   :  { %v416_v7 = vpop.f32.mrf.mxu0 }
  0xf3   :  { %v568_v9 = vmax.f32 %v422_v5, 0.0  ;;  %v417_v10 = vadd.f32 %v2500_v49, %v416_v7  ;;  %806 = vrot.lane.b32.xlu1 %v2557_v6, %s2245_s3  ;;  %783 = vrot.lane.b32.xlu0 %v2557_v6, %s2243_s20 }
  0xf4   :  { %v2089_v11 = vpop.f32.mrf.mxu0 }
  0xf5   :  { %v567_v14 = vmax.f32 %v417_v10, 0.0  ;;  %v604_v17 = vmax.f32 %v566_v12, %v568_v9  ;;  %v432_v20 = vadd.f32 %v2089_v11, %v2500_v49 }
  0xf6   :  { %v426_v15 = vpop.f32.mrf.mxu0 }
  0xf7   :  { %v603_v18 = vmax.f32 %v565_v13, %v567_v14  ;;  %v427_v21 = vadd.f32 %v2500_v49, %v426_v15  ;;  %v570_v29 = vmax.f32 %v432_v20, 0.0 }
  0xf8   :  { %v2092_v19 = vpop.f32.mrf.mxu0 }
  0xf9   :  { %v442_v22 = vadd.f32 %v2092_v19, %v2500_v49  ;;  %v2567_v23 = vpack.c.bf16 %v604_v17, %v603_v18  ;;  %v569_v30 = vmax.f32 %v427_v21, 0.0 }
  0xfa   :  { %v436_v25 = vpop.f32.mrf.mxu0 }
  0xfb   :  { %v572_v26 = vmax.f32 %v442_v22, 0.0  ;;  %v437_v27 = vadd.f32 %v2500_v49, %v436_v25  ;;  %785 = vrot.lane.b32.xlu1 %v2567_v23, %s2243_s20  ;;  %808 = vrot.lane.b32.xlu0 %v2567_v23, %s2245_s3 }
  0xfc   :  { %v2095_v28 = vpop.f32.mrf.mxu0 }
  0xfd   :  { %v571_v31 = vmax.f32 %v437_v27, 0.0  ;;  %v606_v33 = vmax.f32 %v570_v29, %v572_v26  ;;  %v452_v36 = vadd.f32 %v2095_v28, %v2500_v49 }
  0xfe   :  { %v446_v32 = vpop.f32.mrf.mxu0 }
  0xff   :  { %v605_v34 = vmax.f32 %v569_v30, %v571_v31  ;;  %v447_v37 = vadd.f32 %v2500_v49, %v446_v32  ;;  %v574_v45 = vmax.f32 %v452_v36, 0.0 }
 0x100   :  { %v2098_v35 = vpop.f32.mrf.mxu0 }
 0x101   :  { %v462_v38 = vadd.f32 %v2098_v35, %v2500_v49  ;;  %v2577_v40 = vpack.c.bf16 %v606_v33, %v605_v34  ;;  %v573_v46 = vmax.f32 %v447_v37, 0.0 }
 0x102   :  { %v456_v41 = vpop.f32.mrf.mxu0 }
 0x103   :  { %v576_v42 = vmax.f32 %v462_v38, 0.0  ;;  %v457_v43 = vadd.f32 %v2500_v49, %v456_v41  ;;  %810 = vrot.lane.b32.xlu1 %v2577_v40, %s2245_s3  ;;  %787 = vrot.lane.b32.xlu0 %v2577_v40, %s2243_s20  ;;  %v2246_v38 = vmov 0.0|0.0  }
 0x104   :  { %v2101_v44 = vpop.f32.mrf.mxu0 }
 0x105   :  { %v575_v47 = vmax.f32 %v457_v43, 0.0  ;;  %v608_v50 = vmax.f32 %v574_v45, %v576_v42  ;;  %v472_v53 = vadd.f32 %v2101_v44, %v2500_v49 }
 0x106   :  { %v466_v48 = vpop.f32.mrf.mxu0 }
 0x107   :  { %v607_v51 = vmax.f32 %v573_v46, %v575_v47  ;;  %v467_v54 = vadd.f32 %v2500_v49, %v466_v48  ;;  %v578_v62 = vmax.f32 %v472_v53, 0.0 }
 0x108   :  { %v2104_v52 = vpop.f32.mrf.mxu0 }
 0x109   :  { %v482_v56 = vadd.f32 %v2104_v52, %v2500_v49  ;;  %v2587_v57 = vpack.c.bf16 %v608_v50, %v607_v51  ;;  %v577_v63 = vmax.f32 %v467_v54, 0.0 }
 0x10a   :  { %v476_v58 = vpop.f32.mrf.mxu0 }
 0x10b   :  { %v580_v59 = vmax.f32 %v482_v56, 0.0  ;;  %v477_v60 = vadd.f32 %v2500_v49, %v476_v58  ;;  %789 = vrot.lane.b32.xlu1 %v2587_v57, %s2243_s20  ;;  %812 = vrot.lane.b32.xlu0 %v2587_v57, %s2245_s3 }
 0x10c   :  { %v2107_v61 = vpop.f32.mrf.mxu0 }
 0x10d   :  { %v579_v0 = vmax.f32 %v477_v60, 0.0  ;;  %v492_v1 = vadd.f32 %v2107_v61, %v2500_v49  ;;  %v610_v3 = vmax.f32 %v578_v62, %v580_v59 }
 0x10e   :  { %v486_v2 = vpop.f32.mrf.mxu0 }
 0x10f   :  { %v609_v4 = vmax.f32 %v577_v63, %v579_v0  ;;  %v487_v5 = vadd.f32 %v2500_v49, %v486_v2  ;;  %v582_v9 = vmax.f32 %v492_v1, 0.0 }
 0x110   :  { %v2110_v7 = vpop.f32.mrf.mxu0 }
 0x111   :  { %v502_v10 = vadd.f32 %v2110_v7, %v2500_v49  ;;  %v2597_v11 = vpack.c.bf16 %v610_v3, %v609_v4  ;;  %v581_v13 = vmax.f32 %v487_v5, 0.0 }
 0x112   :  { %v496_v12 = vpop.f32.mrf.mxu0 }
 0x113   :  { %v584_v14 = vmax.f32 %v502_v10, 0.0  ;;  %v497_v15 = vadd.f32 %v2500_v49, %v496_v12  ;;  %814 = vrot.lane.b32.xlu1 %v2597_v11, %s2245_s3  ;;  %791 = vrot.lane.b32.xlu0 %v2597_v11, %s2243_s20 }
 0x114   :  { %v2113_v17 = vpop.f32.mrf.mxu0 }
 0x115   :  { %v612_v18 = vmax.f32 %v582_v9, %v584_v14  ;;  %v583_v19 = vmax.f32 %v497_v15, 0.0  ;;  %v512_v20 = vadd.f32 %v2113_v17, %v2500_v49 }
 0x116   :  { %v506_v21 = vpop.f32.mrf.mxu0 }
 0x117   :  { %v611_v22 = vmax.f32 %v581_v13, %v583_v19  ;;  %v507_v25 = vadd.f32 %v2500_v49, %v506_v21  ;;  %v586_v27 = vmax.f32 %v512_v20, 0.0 }
 0x118   :  { %v2116_v26 = vpop.f32.mrf.mxu0 }
 0x119   :  { %v522_v28 = vadd.f32 %v2116_v26, %v2500_v49  ;;  %v2607_v29 = vpack.c.bf16 %v612_v18, %v611_v22  ;;  %v585_v31 = vmax.f32 %v507_v25, 0.0  ;;  %v2203_v22 = vld [vmem:[%s2915_s5 + $0x38] sm:$0xff]   ;;  %v2204_v25 = vld [vmem:[%s2915_s5 + $0x30] sm:$0xff]   ;;  %v2205_v26 = vld [vmem:[%s2915_s5 + $0x28] sm:$0xff]  }
 0x11a   :  { %v516_v30 = vpop.f32.mrf.mxu0 }
 0x11b   :  { %v588_v32 = vmax.f32 %v522_v28, 0.0  ;;  %v517_v33 = vadd.f32 %v2500_v49, %v516_v30  ;;  %793 = vrot.lane.b32.xlu1 %v2607_v29, %s2243_s20  ;;  %816 = vrot.lane.b32.xlu0 %v2607_v29, %s2245_s3  ;;  %v2207_v28 = vld [vmem:[%s2915_s5 + $0x18] sm:$0xff]   ;;  %v2209_v30 = vld [vmem:[%s2915_s5 + $0x8] sm:$0xff]  }
 0x11d   :  { %v614_v34 = vmax.f32 %v586_v27, %v588_v32  ;;  %v587_v35 = vmax.f32 %v517_v33, 0.0  ;;  %v2206_v27 = vld [vmem:[%s2915_s5 + $0x20] sm:$0xff]   ;;  %v2211_v32 = vld [vmem:[%s2915_s5 + $0x58] sm:$0xff]   ;;  %v2212_v33 = vld [vmem:[%s2915_s5 + $0x50] sm:$0xff]  }
 0x11f   :  { %v613_v36 = vmax.f32 %v585_v31, %v587_v35  ;;  %v2210_v31 = vld [vmem:[%s2915_s5] sm:$0xff]  }
 0x120   :  { %v2214_v35 = vld [vmem:[%s2915_s5 + $0x40] sm:$0xff]  }
 0x121   :  { %v2614_v37 = vpack.c.bf16 %v614_v34, %v613_v36  ;;  %v2213_v34 = vld [vmem:[%s2915_s5 + $0x48] sm:$0xff]  }
 0x123   :  { %818 = vrot.lane.b32.xlu1 %v2614_v37, %s2245_s3  ;;  %795 = vrot.lane.b32.xlu0 %v2614_v37, %s2243_s20 }
 0x127   :  { %797 = vrot.lane.b32.xlu1 %v2246_v38, %s2243_s20  ;;  %820 = vrot.lane.b32.xlu0 %v2246_v38, %s2245_s3 }
 0x12b   :  { %822 = vrot.lane.b32.xlu1 %v2244_v16, %s2245_s3 }
 0x145   :  { %v776_v49 = vpop.permute.xlu0 %775 }
 0x146   :  { %v827_v41 = vsel %vm824_vm1, 0, %v776_v49 }
 0x14d   :  { %v801_v42 = vpop.permute.xlu1 %800  ;;  %v778_v44 = vpop.permute.xlu0 %777 }
 0x14e   :  { %v863_v43 = vsel %vm861_vm2, %v827_v41, %v801_v42  ;;  %v830_v45 = vsel %vm824_vm1, %v2518_v8, %v778_v44 }
 0x14f   :  { %2135 = vmatprep.mubr.msk.bf16.mxu1 %vm928_vm3, %v863_v43 }
 0x155   :  { %v803_v46 = vpop.permute.xlu1 %802  ;;  %v780_v48 = vpop.permute.xlu0 %779 }
 0x156   :  { %v865_v47 = vsel %vm861_vm2, %v830_v45, %v803_v46  ;;  %v833_v50 = vsel %vm824_vm1, %v2527_v24, %v780_v48 }
 0x157   :  { %2136 = vmatmul.mubr.msk.bf16.vlgmr.msra.gmra.mxu1 %vm928_vm3, %v865_v47 }
 0x158   :  { %1330 = vmatpush1.bf16.msra.mxu1 %v2203_v22 }
 0x159   :  { %1331 = vmatprep.subr.bf16.mxu1 %v2244_v16 }
 0x15c   :  { %1332 = vmatpush1.bf16.msra.mxu1 %v2204_v25 }
 0x15d   :  { %v805_v51 = vpop.permute.xlu0 %804  ;;  %v782_v53 = vpop.permute.xlu1 %781  ;;  %1333 = vmatprep.subr.bf16.mxu1 %v2244_v16 }
 0x15e   :  { %v867_v52 = vsel %vm861_vm2, %v833_v50, %v805_v51  ;;  %v836_v54 = vsel %vm824_vm1, %v2537_v39, %v782_v53 }
 0x15f   :  { %2139 = vmatprep.mubr.msk.bf16.mxu1 %vm928_vm3, %v867_v52 }
 0x160   :  { %1334 = vmatpush1.bf16.msra.mxu1 %v2205_v26 }
 0x161   :  { %1335 = vmatprep.subr.bf16.mxu1 %v2244_v16 }
 0x164   :  { %1336 = vmatpush1.bf16.msra.mxu1 %v2206_v27 }
 0x165   :  { %v807_v56 = vpop.permute.xlu1 %806  ;;  %v784_v58 = vpop.permute.xlu0 %783  ;;  %1337 = vmatprep.subr.bf16.mxu1 %v2244_v16 }
 0x166   :  { %v869_v8 = vsel %vm861_vm2, %v836_v54, %v807_v56  ;;  %v839_v59 = vsel %vm824_vm1, %v2547_v55, %v784_v58 }
 0x167   :  { %2140 = vmatmul.mubr.msk.bf16.gmra.mxu1 %vm928_vm3, %v869_v8 }
 0x168   :  { %1338 = vmatpush1.bf16.msra.mxu1 %v2207_v28 }
 0x169   :  { %1339 = vmatprep.subr.bf16.mxu1 %v2244_v16 }
 0x16d   :  { %v809_v60 = vpop.permute.xlu0 %808  ;;  %v786_v61 = vpop.permute.xlu1 %785 }
 0x16e   :  { %v871_v24 = vsel %vm861_vm2, %v839_v59, %v809_v60  ;;  %v842_v62 = vsel %vm824_vm1, %v2557_v6, %v786_v61 }
 0x16f   :  { %2143 = vmatprep.mubr.msk.bf16.mxu1 %vm928_vm3, %v871_v24 }
 0x175   :  { %v811_v63 = vpop.permute.xlu1 %810  ;;  %v788_v0 = vpop.permute.xlu0 %787 }
 0x176   :  { %v873_v39 = vsel %vm861_vm2, %v842_v62, %v811_v63  ;;  %v845_v1 = vsel %vm824_vm1, %v2567_v23, %v788_v0 }
 0x177   :  { %2144 = vmatmul.mubr.msk.bf16.gmra.mxu1 %vm928_vm3, %v873_v39 }
 0x17d   :  { %v813_v2 = vpop.permute.xlu0 %812  ;;  %v790_v3 = vpop.permute.xlu1 %789 }
 0x17e   :  { %v875_v55 = vsel %vm861_vm2, %v845_v1, %v813_v2  ;;  %v848_v4 = vsel %vm824_vm1, %v2577_v40, %v790_v3 }
 0x17f   :  { %2147 = vmatprep.mubr.msk.bf16.mxu1 %vm928_vm3, %v875_v55 }
 0x185   :  { %v815_v5 = vpop.permute.xlu1 %814  ;;  %v792_v7 = vpop.permute.xlu0 %791 }
 0x186   :  { %v877_v6 = vsel %vm861_vm2, %v848_v4, %v815_v5  ;;  %v851_v9 = vsel %vm824_vm1, %v2587_v57, %v792_v7 }
 0x187   :  { %2148 = vmatmul.mubr.msk.bf16.gmra.mxu1 %vm928_vm3, %v877_v6 }
 0x18d   :  { %v817_v10 = vpop.permute.xlu0 %816  ;;  %v794_v12 = vpop.permute.xlu1 %793 }
 0x18e   :  { %v879_v23 = vsel %vm861_vm2, %v851_v9, %v817_v10  ;;  %v854_v13 = vsel %vm824_vm1, %v2597_v11, %v794_v12 }
 0x18f   :  { %2151 = vmatprep.mubr.msk.bf16.mxu1 %vm928_vm3, %v879_v23 }
 0x195   :  { %v819_v14 = vpop.permute.xlu1 %818  ;;  %v796_v40 = vpop.permute.xlu0 %795 }
 0x196   :  { %v881_v15 = vsel %vm861_vm2, %v854_v13, %v819_v14  ;;  %v857_v17 = vsel %vm824_vm1, %v2607_v29, %v796_v40  ;;  %v2208_v29 = vld [vmem:[%s2915_s5 + $0x10] sm:$0xff]  }
 0x197   :  { %2152 = vmatmul.mubr.msk.bf16.gmra.mxu1 %vm928_vm3, %v881_v15 }
 0x198   :  { %1340 = vmatpush1.bf16.msra.mxu1 %v2208_v29 }
 0x199   :  { %v798_v18 = vpop.permute.xlu1 %797  ;;  %v821_v57 = vpop.permute.xlu0 %820  ;;  %1341 = vmatprep.subr.bf16.mxu1 %v2244_v16 }
 0x19a   :  { %v883_v19 = vsel %vm861_vm2, %v857_v17, %v821_v57  ;;  %v860_v20 = vsel %vm824_vm1, %v2614_v37, %v798_v18  ;;  %v2723_v37 = vld [vmem:[%s2916_s4] ss:$0 sm:$0xff] }
 0x19b   :  { %2155 = vmatprep.mubr.msk.bf16.mxu1 %vm928_vm3, %v883_v19 }
 0x19c   :  { %1342 = vmatpush1.bf16.msra.mxu1 %v2209_v30 }
 0x19d   :  { %v823_v21 = vpop.permute.xlu1 %822  ;;  %1343 = vmatprep.subr.bf16.mxu1 %v2244_v16 }
 0x19e   :  { %v885_v11 = vsel %vm861_vm2, %v860_v20, %v823_v21 }
 0x19f   :  { %2156 = vmatmul.mubr.msk.bf16.gmra.mxu1 %vm928_vm3, %v885_v11 }
 0x1a0   :  { %1344 = vmatpush1.bf16.msra.mxu1 %v2210_v31 }
 0x1a1   :  { %1353 = vmatprep.subr.bf16.mxu1 %v2244_v16 }
 0x1a4   :  { %1354 = vmatpush2.bf16.msra.mxu1 %v2211_v32 }
 0x1a5   :  { %1355 = vmatprep.subr.bf16.mxu1 %v2244_v16 }
 0x1a8   :  { %1356 = vmatpush2.bf16.msra.mxu1 %v2212_v33 }
 0x1a9   :  { %1357 = vmatprep.subr.bf16.mxu1 %v2244_v16 }
 0x1ac   :  { %1358 = vmatpush2.bf16.msra.mxu1 %v2213_v34 }
 0x1ad   :  { %1359 = vmatprep.subr.bf16.mxu1 %v2244_v16 }
 0x1b0   :  { %1360 = vmatpush2.bf16.msra.mxu1 %v2214_v35 }
 0x217   :  { %v2137_v36 = vpop.f32.mrf.mxu1 }
 0x218   :  { %v996_v43 = vadd.f32 %v2137_v36, %v2723_v37 }
 0x219   :  { %v987_v49 = vpop.f32.mrf.mxu1 }
 0x21a   :  { %v988_v41 = vadd.f32 %v2723_v37, %v987_v49  ;;  %v1084_v48 = vmax.f32 %v996_v43, 0.0 }
 0x21b   :  { %v2138_v42 = vpop.f32.mrf.mxu1 }
 0x21c   :  { %v999_v44 = vadd.f32 %v2138_v42, %v2723_v37  ;;  %v1082_v46 = vmax.f32 %v988_v41, 0.0 }
 0x21d   :  { %v990_v45 = vpop.f32.mrf.mxu1 }
 0x21e   :  { %v991_v47 = vadd.f32 %v2723_v37, %v990_v45  ;;  %v1085_v50 = vmax.f32 %v999_v44, 0.0  ;;  %v1106_v52 = vmax.f32 %v1082_v46, %v1084_v48 }
 0x220   :  { %v1083_v51 = vmax.f32 %v991_v47, 0.0 }
 0x222   :  { %v1107_v53 = vmax.f32 %v1083_v51, %v1085_v50 }
 0x224   :  { %v2729_v54 = vpack.c.bf16 %v1107_v53, %v1106_v52 }
 0x226   :  { %1203 = vrot.lane.b32.xlu0 %v2729_v54, %s2245_s3 }
 0x227   :  { %v2141_v56 = vpop.f32.mrf.mxu1 }
 0x228   :  { %v1012_v60 = vadd.f32 %v2141_v56, %v2723_v37 }
 0x229   :  { %v1003_v8 = vpop.f32.mrf.mxu1 }
 0x22a   :  { %v1004_v58 = vadd.f32 %v2723_v37, %v1003_v8  ;;  %v1088_v39 = vmax.f32 %v1012_v60, 0.0  ;;  %v2216_v60 = vld [vmem:[%s2917_s7 + $0x38] sm:$0xff]  }
 0x22b   :  { %v2142_v59 = vpop.f32.mrf.mxu1 }
 0x22c   :  { %v1015_v24 = vadd.f32 %v2142_v59, %v2723_v37  ;;  %v1086_v62 = vmax.f32 %v1004_v58, 0.0  ;;  %v2215_v58 = vld [vmem:[%s2917_s7 + $0x78] sm:$0xff]  }
 0x22d   :  { %v1006_v61 = vpop.f32.mrf.mxu1  ;;  %2013 = vmatprep.subr.bf16.mxu0 %v2215_v58 }
 0x22e   :  { %v1007_v63 = vadd.f32 %v2723_v37, %v1006_v61  ;;  %v1089_v0 = vmax.f32 %v1015_v24, 0.0  ;;  %v1108_v2 = vmax.f32 %v1086_v62, %v1088_v39  ;;  %2014 = vmatpush3.bf16.msra.mxu0 %v2216_v60  ;;  %v2218_v61 = vld [vmem:[%s2917_s7 + $0x30] sm:$0xff]   ;;  %v2219_v62 = vld [vmem:[%s2917_s7 + $0x68] sm:$0xff]  }
 0x230   :  { %v1087_v1 = vmax.f32 %v1007_v63, 0.0  ;;  %v2220_v63 = vld [vmem:[%s2917_s7 + $0x28] sm:$0xff]  }
 0x232   :  { %v1109_v55 = vmax.f32 %v1087_v1, %v1089_v0 }
 0x234   :  { %v2737_v3 = vpack.c.bf16 %v1109_v55, %v1108_v2 }
 0x236   :  { %1205 = vrot.lane.b32.xlu1 %v2737_v3, %s2245_s3  ;;  %1909 = vmatprep.mubr.msk.bf16.mxu1 %vm861_vm2, %v2737_v3 }
 0x237   :  { %v2145_v4 = vpop.f32.mrf.mxu1 }
 0x238   :  { %v1028_v9 = vadd.f32 %v2145_v4, %v2723_v37 }
 0x239   :  { %v1019_v5 = vpop.f32.mrf.mxu1 }
 0x23a   :  { %v1020_v6 = vadd.f32 %v2723_v37, %v1019_v5  ;;  %v1092_v14 = vmax.f32 %v1028_v9, 0.0 }
 0x23b   :  { %v2146_v7 = vpop.f32.mrf.mxu1 }
 0x23c   :  { %v1031_v10 = vadd.f32 %v2146_v7, %v2723_v37  ;;  %v1090_v12 = vmax.f32 %v1020_v6, 0.0  ;;  %v2222_v7 = vld [vmem:[%s2917_s7 + $0x20] sm:$0xff]  }
 0x23d   :  { %v1022_v23 = vpop.f32.mrf.mxu1 }
 0x23e   :  { %v1023_v13 = vadd.f32 %v2723_v37, %v1022_v23  ;;  %v1093_v40 = vmax.f32 %v1031_v10, 0.0  ;;  %v1110_v17 = vmax.f32 %v1090_v12, %v1092_v14  ;;  %v2223_v10 = vld [vmem:[%s2917_s7 + $0x58] sm:$0xff]   ;;  %v2247_v12 = vmov 0.0   ;;  %v2226_v14 = vld [vmem:[%s2917_s7 + $0x50] sm:$0xff]  }
 0x23f   :  { %v2224_v23 = vld [vmem:[%s2917_s7 + $0x18] sm:$0xff]   ;;  %2159 = vmatprep.subr.bf16.mxu1 %v2247_v12 }
 0x240   :  { %v1091_v15 = vmax.f32 %v1023_v13, 0.0  ;;  %v2225_v13 = vld [vmem:[%s2917_s7 + $0xb8] sm:$0xff]  }
 0x242   :  { %v1111_v18 = vmax.f32 %v1091_v15, %v1093_v40  ;;  %v2227_v40 = vld [vmem:[%s2917_s7 + $0x10] sm:$0xff]  }
 0x243   :  { %v2228_v15 = vld [vmem:[%s2917_s7 + $0xb0] sm:$0xff]  }
 0x244   :  { %v2747_v57 = vpack.c.bf16 %v1111_v18, %v1110_v17  ;;  %v2229_v17 = vld [vmem:[%s2917_s7 + $0xa8] sm:$0xff]  }
 0x245   :  { %v2230_v18 = vld [vmem:[%s2917_s7 + $0x48] sm:$0xff]  }
 0x246   :  { %1207 = vrot.lane.b32.xlu0 %v2747_v57, %s2245_s3 }
 0x247   :  { %v2149_v19 = vpop.f32.mrf.mxu1 }
 0x248   :  { %v1044_v22 = vadd.f32 %v2149_v19, %v2723_v37  ;;  %v2232_v19 = vld [vmem:[%s2917_s7 + $0xa0] sm:$0xff]  }
 0x249   :  { %v1035_v20 = vpop.f32.mrf.mxu1 }
 0x24a   :  { %v1036_v21 = vadd.f32 %v2723_v37, %v1035_v20  ;;  %v1096_v29 = vmax.f32 %v1044_v22, 0.0  ;;  %v2233_v20 = vld [vmem:[%s2917_s7 + $0x98] sm:$0xff]   ;;  %v84_v22 = vld [vmem:[%s2912_s0 + $0x168] sm:$0xff] }
 0x24b   :  { %v2150_v11 = vpop.f32.mrf.mxu1 }
 0x24c   :  { %v1047_v25 = vadd.f32 %v2150_v11, %v2723_v37  ;;  %v1094_v27 = vmax.f32 %v1036_v21, 0.0  ;;  %v2236_v21 = vld [vmem:[%s2917_s7 + $0x90] sm:$0xff]   ;;  %v83_v11 = vld [vmem:[%s2912_s0 + $0x160] sm:$0xff] }
 0x24d   :  { %v1038_v26 = vpop.f32.mrf.mxu1  ;;  %2117 = vmatprep.mubr.msk.f32.mxu0 %vm95_vm0, %v83_v11 }
 0x24e   :  { %v1039_v28 = vadd.f32 %v2723_v37, %v1038_v26  ;;  %v1097_v30 = vmax.f32 %v1047_v25, 0.0  ;;  %v1112_v32 = vmax.f32 %v1094_v27, %v1096_v29  ;;  %2118 = vmatmul.mubr.msk.f32.gmra.mxu0 %vm95_vm0, %v84_v22  ;;  %v2234_v25 = vld [vmem:[%s2917_s7 + $0x40] sm:$0xff]   ;;  %v2237_v27 = vld [vmem:[%s2917_s7 + $0x88] sm:$0xff]   ;;  %v86_v29 = vld [vmem:[%s2912_s0 + $0x178] sm:$0xff] }
 0x24f   :  { %v2235_v26 = vld [vmem:[%s2917_s7] sm:$0xff]  }
 0x250   :  { %v1095_v31 = vmax.f32 %v1039_v28, 0.0  ;;  %v85_v28 = vld [vmem:[%s2912_s0 + $0x170] sm:$0xff] }
 0x251   :  { %2120 = vmatprep.mubr.msk.f32.mxu0 %vm95_vm0, %v85_v28  ;;  %v1915_v28 = vld [vmem:[%s2920_s8] ss:$0 sm:$0xff] }
 0x252   :  { %v1113_v33 = vmax.f32 %v1095_v31, %v1097_v30  ;;  %2121 = vmatmul.mubr.msk.f32.gmra.mxu0 %vm95_vm0, %v86_v29  ;;  %v2238_v30 = vld [vmem:[%s2917_s7 + $0x80] sm:$0xff]  }
 0x254   :  { %v1194_v34 = vpack.c.bf16 %v1113_v33, %v1112_v32 }
 0x256   :  { %1209 = vrot.lane.b32.xlu1 %v1194_v34, %s2245_s3 }
 0x257   :  { %v2153_v35 = vpop.f32.mrf.mxu1 }
 0x258   :  { %v1060_v42 = vadd.f32 %v2153_v35, %v2723_v37 }
 0x259   :  { %v1051_v36 = vpop.f32.mrf.mxu1 }
 0x25a   :  { %v1052_v49 = vadd.f32 %v2723_v37, %v1051_v36  ;;  %1213 = vrot.lane.b32.xlu1 %v2246_v38, %s2245_s3  ;;  %v1100_v48 = vmax.f32 %v1060_v42, 0.0 }
 0x25b   :  { %v2154_v41 = vpop.f32.mrf.mxu1 }
 0x25c   :  { %v1063_v43 = vadd.f32 %v2154_v41, %v2723_v37  ;;  %v1098_v45 = vmax.f32 %v1052_v49, 0.0 }
 0x25d   :  { %v1054_v44 = vpop.f32.mrf.mxu1 }
 0x25e   :  { %v1055_v46 = vadd.f32 %v2723_v37, %v1054_v44  ;;  %v1101_v50 = vmax.f32 %v1063_v43, 0.0  ;;  %v1114_v53 = vmax.f32 %v1098_v45, %v1100_v48  ;;  %v2217_v37 = vld [vmem:[%s2917_s7 + $0x70] sm:$0xff]  }
 0x25f   :  { %v2157_v47 = vpop.f32.mrf.mxu1  ;;  %2015 = vmatprep.subr.bf16.mxu0 %v2217_v37 }
 0x260   :  { %v1099_v51 = vmax.f32 %v1055_v46, 0.0  ;;  %2016 = vmatpush3.bf16.msra.mxu0 %v2218_v61  ;;  %v1896_v46 = vld [vmem:[%s2918_s6] ss:$0 sm:$0xff] }
 0x261   :  { %v1067_v52 = vpop.f32.mrf.mxu1  ;;  %2017 = vmatprep.subr.bf16.mxu0 %v2219_v62 }
 0x262   :  { %v1115_v56 = vmax.f32 %v1099_v51, %v1101_v50 }
 0x263   :  { %v2158_v8 = vpop.f32.mrf.mxu1 }
 0x264   :  { %v1195_v59 = vpack.c.bf16 %v1115_v56, %v1114_v53  ;;  %2018 = vmatpush3.bf16.msra.mxu0 %v2220_v63 }
 0x265   :  { %v1070_v24 = vpop.f32.mrf.mxu1 }
 0x266   :  { %1211 = vrot.lane.b32.xlu0 %v1195_v59, %s2245_s3 }
 0x298   :  { %v1204_v39 = vpop.permute.xlu0 %1203 }
 0x299   :  { %1911 = vmatmul.mubr.msk.bf16.vlgmr.msra.gmra.mxu1 %vm1910_vm4, %v1204_v39 }
 0x29a   :  { %1912 = vmatprep.mubr.msk.bf16.mxu1 %vm861_vm2, %v2747_v57  ;;  %2160 = vmatpush3.bf16.msra.mxu1 %v2225_v13 }
 0x29b   :  { %2161 = vmatprep.subr.bf16.mxu1 %v2247_v12 }
 0x29e   :  { %2162 = vmatpush3.bf16.msra.mxu1 %v2228_v15 }
 0x29f   :  { %2163 = vmatprep.subr.bf16.mxu1 %v2247_v12 }
 0x2a2   :  { %2164 = vmatpush3.bf16.msra.mxu1 %v2229_v17 }
 0x2a3   :  { %2165 = vmatprep.subr.bf16.mxu1 %v2247_v12 }
 0x2a6   :  { %2166 = vmatpush3.bf16.msra.mxu1 %v2232_v19 }
 0x2a7   :  { %2167 = vmatprep.subr.bf16.mxu1 %v2247_v12 }
 0x2a8   :  { %v1206_v0 = vpop.permute.xlu1 %1205 }
 0x2a9   :  { %v1220_v1 = vsel %vm861_vm2, %v2729_v54, %v1206_v0 }
 0x2aa   :  { %1370 = vmatmul.mubr.bf16.gmra.mxu1 %v1220_v1 }
 0x2ab   :  { %1913 = vmatprep.mubr.msk.bf16.mxu1 %vm861_vm2, %v1194_v34  ;;  %2168 = vmatpush3.bf16.msra.mxu1 %v2233_v20 }
 0x2ac   :  { %2169 = vmatprep.subr.bf16.mxu1 %v2247_v12 }
 0x2af   :  { %2170 = vmatpush3.bf16.msra.mxu1 %v2236_v21  ;;  %v2240_v21 = vld [vmem:[%s2919_s9 + $0x10] sm:$0xff]  }
 0x2b0   :  { %2171 = vmatprep.subr.bf16.mxu1 %v2247_v12 }
 0x2b3   :  { %2172 = vmatpush3.bf16.msra.mxu1 %v2237_v27 }
 0x2b4   :  { %2173 = vmatprep.subr.bf16.mxu1 %v2247_v12 }
 0x2b7   :  { %2174 = vmatpush3.bf16.msra.mxu1 %v2238_v30 }
 0x2b8   :  { %v1208_v2 = vpop.permute.xlu0 %1207 }
 0x2b9   :  { %v1224_v55 = vsel %vm861_vm2, %v2737_v3, %v1208_v2  ;;  %v2221_v3 = vld [vmem:[%s2917_s7 + $0x60] sm:$0xff]  }
 0x2ba   :  { %1378 = vmatmul.mubr.bf16.gmra.mxu1 %v1224_v55  ;;  %2019 = vmatprep.subr.bf16.mxu0 %v2221_v3 }
 0x2bb   :  { %1914 = vmatprep.mubr.msk.bf16.mxu1 %vm861_vm2, %v1195_v59  ;;  %2020 = vmatpush3.bf16.msra.mxu0 %v2222_v7 }
 0x2bc   :  { %2021 = vmatprep.subr.bf16.mxu0 %v2223_v10 }
 0x2bf   :  { %2022 = vmatpush3.bf16.msra.mxu0 %v2224_v23 }
 0x2c0   :  { %2023 = vmatprep.subr.bf16.mxu0 %v2226_v14 }
 0x2c3   :  { %2024 = vmatpush3.bf16.msra.mxu0 %v2227_v40 }
 0x2c4   :  { %2025 = vmatprep.subr.bf16.mxu0 %v2230_v18 }
 0x2c8   :  { %v1210_v4 = vpop.permute.xlu1 %1209 }
 0x2c9   :  { %v1228_v5 = vsel %vm861_vm2, %v2747_v57, %v1210_v4  ;;  %v2231_v57 = vld [vmem:[%s2917_s7 + $0x8] sm:$0xff]  }
 0x2ca   :  { %1386 = vmatmul.mubr.bf16.gmra.mxu1 %v1228_v5  ;;  %2026 = vmatpush3.bf16.msra.mxu0 %v2231_v57  ;;  %v2239_v57 = vld [vmem:[%s2919_s9 + $0x18] sm:$0xff]  }
 0x2cb   :  { %1393 = vmatprep.mubr.bf16.mxu1 %v2246_v38  ;;  %2027 = vmatprep.subr.bf16.mxu0 %v2234_v25  ;;  %v2241_v25 = vld [vmem:[%s2919_s9 + $0x8] sm:$0xff]  }
 0x2cc   :  { %v1214_v9 = vpop.permute.xlu1 %1213 }
 0x2ce   :  { %2028 = vmatpush3.bf16.msra.mxu0 %v2235_v26  ;;  %v2242_v26 = vld [vmem:[%s2919_s9] sm:$0xff]  }
 0x2cf   :  { %2179 = vmatprep.subr.bf16.mxu0 %v2247_v12 }
 0x2d8   :  { %v1212_v6 = vpop.permute.xlu0 %1211 }
 0x2d9   :  { %v1232_v54 = vsel %vm861_vm2, %v1194_v34, %v1212_v6 }
 0x2da   :  { %1394 = vmatmul.mubr.bf16.gmra.mxu1 %v1232_v54 }
 0x2db   :  { %1401 = vmatprep.mubr.bf16.mxu1 %v2244_v16  ;;  %v1236_v16 = vsel %vm861_vm2, %v1195_v59, %v1214_v9 }
 0x2e2   :  { %1402 = vmatmul.mubr.bf16.gmra.mxu1 %v1236_v16 }
 0x2e3   :  { %2175 = vmatprep.mubr.msk.bf16.mxu1 %vm2248_vm5, %v2247_v12 }
 0x2ea   :  { %2176 = vmatmul.mubr.bf16.vlgmr.msra.gmra.mxu1 %v2246_v38 }
 0x30e   :  { %v2119_v40 = vpop.f32.mrf.mxu0 }
 0x310   :  { %v526_v15 = vpop.f32.mrf.mxu0 }
 0x312   :  { %v2122_v17 = vpop.f32.mrf.mxu0 }
 0x314   :  { %v536_v18 = vpop.f32.mrf.mxu0 }
 0x359   :  { %v1363_v31 = vpop.f32.mrf.mxu1 }
 0x35a   :  { %v1364_v8 = vadd.f32 %v1896_v46, %v1363_v31 }
 0x35b   :  { %v1365_v32 = vpop.f32.mrf.mxu1 }
 0x35c   :  { %v1410_v1 = vmax.f32 %v1364_v8, 0.0 }
 0x35d   :  { %v1366_v33 = vpop.f32.mrf.mxu1 }
 0x35e   :  { %v1367_v38 = vadd.f32 %v1896_v46, %v1366_v33 }
 0x35f   :  { %v1368_v34 = vpop.f32.mrf.mxu1 }
 0x360   :  { %v1411_v37 = vmax.f32 %v1367_v38, 0.0 }
 0x36a   :  { %v1371_v35 = vpop.f32.mrf.mxu1 }
 0x36b   :  { %v1372_v51 = vadd.f32 %v1896_v46, %v1371_v35 }
 0x36c   :  { %v1373_v36 = vpop.f32.mrf.mxu1 }
 0x36d   :  { %v1412_v61 = vmax.f32 %v1372_v51, 0.0 }
 0x36e   :  { %v1374_v49 = vpop.f32.mrf.mxu1 }
 0x36f   :  { %v1375_v47 = vadd.f32 %v1896_v46, %v1374_v49  ;;  %v1422_v5 = vmax.f32 %v1410_v1, %v1412_v61 }
 0x370   :  { %v1376_v41 = vpop.f32.mrf.mxu1 }
 0x371   :  { %v1413_v58 = vmax.f32 %v1375_v47, 0.0 }
 0x373   :  { %v1423_v2 = vmax.f32 %v1411_v37, %v1413_v58 }
 0x375   :  { %v1452_v54 = vpack.c.bf16 %v1423_v2, %v1422_v5 }
 0x37a   :  { %v1379_v42 = vpop.f32.mrf.mxu1 }
 0x37b   :  { %v1380_v53 = vadd.f32 %v1896_v46, %v1379_v42 }
 0x37c   :  { %v1381_v43 = vpop.f32.mrf.mxu1 }
 0x37d   :  { %v1414_v63 = vmax.f32 %v1380_v53, 0.0  ;;  %v1940_v43 = vld [vmem:[%s2921_s10] ss:$0 sm:$0xff] }
 0x37e   :  { %v1382_v44 = vpop.f32.mrf.mxu1 }
 0x37f   :  { %v1383_v56 = vadd.f32 %v1896_v46, %v1382_v44 }
 0x380   :  { %v1384_v45 = vpop.f32.mrf.mxu1 }
 0x381   :  { %v1415_v39 = vmax.f32 %v1383_v56, 0.0 }
 0x38a   :  { %v1387_v48 = vpop.f32.mrf.mxu1 }
 0x38b   :  { %v1388_v50 = vadd.f32 %v1896_v46, %v1387_v48 }
 0x38c   :  { %v1389_v52 = vpop.f32.mrf.mxu1 }
 0x38d   :  { %v1416_v60 = vmax.f32 %v1388_v50, 0.0 }
 0x38e   :  { %v1390_v59 = vpop.f32.mrf.mxu1 }
 0x38f   :  { %v1391_v24 = vadd.f32 %v1896_v46, %v1390_v59  ;;  %v1424_v55 = vmax.f32 %v1414_v63, %v1416_v60 }
 0x390   :  { %v1392_v62 = vpop.f32.mrf.mxu1 }
 0x391   :  { %v1417_v0 = vmax.f32 %v1391_v24, 0.0 }
 0x393   :  { %v1425_v4 = vmax.f32 %v1415_v39, %v1417_v0 }
 0x395   :  { %v1453_v6 = vpack.c.bf16 %v1425_v4, %v1424_v55 }
 0x397   :  { %1686 = vmatprep.mubr.bf16.mxu0 %v1453_v6 }
 0x398   :  { %1687 = vmatmul.mubr.bf16.vlgmr.msra.gmra.mxu0 %v1452_v54 }
 0x399   :  { %2187 = vmatprep.mubr.msk.bf16.mxu0 %vm2248_vm5, %v2247_v12  ;;  %2180 = vmatpush3.bf16.msra.mxu0 %v2239_v57 }
 0x39a   :  { %v1395_v3 = vpop.f32.mrf.mxu1  ;;  %2181 = vmatprep.subr.bf16.mxu0 %v2247_v12 }
 0x39c   :  { %v1397_v7 = vpop.f32.mrf.mxu1 }
 0x39d   :  { %2182 = vmatpush3.bf16.msra.mxu0 %v2240_v21 }
 0x39e   :  { %v1398_v9 = vpop.f32.mrf.mxu1  ;;  %2183 = vmatprep.subr.bf16.mxu0 %v2247_v12 }
 0x3a0   :  { %v1400_v10 = vpop.f32.mrf.mxu1 }
 0x3a1   :  { %2184 = vmatpush3.bf16.msra.mxu0 %v2241_v25 }
 0x3a2   :  { %v1403_v23 = vpop.f32.mrf.mxu1  ;;  %2185 = vmatprep.subr.bf16.mxu0 %v2247_v12 }
 0x3a4   :  { %v1405_v16 = vpop.f32.mrf.mxu1 }
 0x3a5   :  { %2186 = vmatpush3.bf16.msra.mxu0 %v2242_v26 }
 0x3a6   :  { %v1406_v13 = vpop.f32.mrf.mxu1 }
 0x3a8   :  { %v1408_v14 = vpop.f32.mrf.mxu1 }
 0x3aa   :  { %v1729_v19 = vpop.f32.mrf.mxu1 }
 0x3ac   :  { %v2177_v20 = vpop.f32.mrf.mxu1 }
 0x3ae   :  { %v1732_v11 = vpop.f32.mrf.mxu1 }
 0x3b0   :  { %v2178_v22 = vpop.f32.mrf.mxu1 }
 0x458   :  { %v2029_v27 = vpop.f32.mrf.mxu0 }
 0x45a   :  { %v2030_v29 = vpop.f32.mrf.mxu0 }
 0x45b   :  { %v2031_v30 = vadd.f32 %v2030_v29, %v2029_v27 }
 0x45c   :  { %v2032_v31 = vpop.f32.mrf.mxu0 }
 0x45d   :  { %v1689_v32 = vadd.f32 %v2031_v30, %v1915_v28 }
 0x45e   :  { %v2033_v33 = vpop.f32.mrf.mxu0 }
 0x45f   :  { %v2034_v34 = vadd.f32 %v2033_v33, %v2032_v31  ;;  %v1730_v35 = vadd.f32 %v1729_v19, %v1689_v32 }
 0x461   :  { %v1692_v36 = vadd.f32 %v2034_v34, %v1915_v28  ;;  %v1736_v12 = vmax.f32 %v1730_v35, 0.0 }
 0x463   :  { %v1733_v49 = vadd.f32 %v1732_v11, %v1692_v36 }
 0x465   :  { %v1737_v41 = vmax.f32 %v1733_v49, 0.0 }
 0x467   :  { %v1738_v42 = vpack.c.bf16 %v1737_v41, %v1736_v12 }
 0x469   :  { %2188 = vmatmul.mubr.msk.bf16.vlgmr.msra.gmra.mxu0 %vm861_vm2, %v1738_v42 }
 0x529   :  { %v1815_v44 = vpop.f32.mrf.mxu0 }
 0x52a   :  { %v1816_v45 = vadd.f32 %v1940_v43, %v1815_v44 }
 0x52b   :  { %v2189_v46 = vpop.f32.mrf.mxu0 }
 0x52c   :  { %1822 = vst [vmem:[%s2922_s11] sm:$0xff] %v1816_v45 }
 0x52d   :  { %v1818_v47 = vpop.f32.mrf.mxu0 }
 0x52e   :  { %v1819_v48 = vadd.f32 %v1940_v43, %v1818_v47 }
 0x52f   :  { %v2190_v50 = vpop.f32.mrf.mxu0 }
 0x530   :  { %1823 = vst [vmem:[%s2922_s11 + $0x8] sm:$0xff] %v1819_v48 }

</bundles_post_ra>
